<compile_context>
chip_gen: v7x
topology: tpu7x:2x2x1
jax: 0.10.0
libtpu: 0.0.40
codegen_flags: <defaults>
</compile_context>

<pallas_src>
import functools

import jax
import jax.numpy as jnp
from jax import lax
from jax.experimental import pallas as pl
from jax.experimental.pallas import tpu as pltpu


def _round_up(x, m):
    return (x + m - 1) // m * m


def _vmem_capacity_bytes():
    """Device VMEM capacity with a conservative fallback (v7x per-TC size)."""
    try:
        return int(pltpu.get_tpu_info().vmem_capacity_bytes)
    except Exception:
        return 64 * 1024 * 1024


def bottleneck_kernel(x_ref,
                      w1_ref, s1_ref, b1_ref,
                      w2_ref, s2_ref, b2_ref,
                      w3_ref, s3_ref, b3_ref,
                      o_ref, pad_ref, *, H, W, PAD):
    HW = H * W
    Wp = w1_ref.shape[1]                       # lane-padded bottleneck width

    x_bf = x_ref[0]                            # (HW, Cp) bf16 from HBM

    # ---- conv1 (1x1) + bn1 + relu ------------------------------------------
    h1 = jnp.dot(x_bf, w1_ref[...], preferred_element_type=jnp.float32)
    h1 = jnp.maximum(h1 * s1_ref[...] + b1_ref[...], 0.0)          # (HW, Wp) f32

    # ---- conv2 (3x3, stride 1, pad 1) + bn2 + relu ---------------------------
    # Pre-masked, row-shifted tap copies in a zero-haloed scratch:
    #   lanes [0,   Wp): h1 masked to col<W-1, rows [PAD+1, PAD+1+HW)  -> dx=-1 tap
    #   lanes [Wp, 2Wp): h1 unmasked,          rows [PAD,   PAD+HW)    -> dx= 0 tap
    #   lanes [2Wp,3Wp): h1 masked to col>0,   rows [PAD-1, PAD-1+HW)  -> dx=+1 tap
    # so every dy of the 3x3 is one contiguous read at row PAD + dy*W followed
    # by one matmul with K = 3*Wp.  Column masks are built in-kernel (iota) and
    # applied in f32; the bf16 cast happens once, at the store.
    col = lax.broadcasted_iota(jnp.int32, (HW, Wp), 0) % W
    h1_l = jnp.where(col < W - 1, h1, 0.0)     # source valid for the dx=-1 tap
    h1_r = jnp.where(col > 0, h1, 0.0)         # source valid for the dx=+1 tap

    # zero the halo rows (re-zeroed every step: safe under "parallel" sharding),
    # then write the three copies (they overwrite the interior of the halo).
    pad_ref[pl.ds(0, PAD + 1), :] = jnp.zeros((PAD + 1, 3 * Wp), jnp.bfloat16)
    pad_ref[pl.ds(PAD + HW - 1, PAD + 1), :] = jnp.zeros((PAD + 1, 3 * Wp),
                                                         jnp.bfloat16)
    pad_ref[pl.ds(PAD + 1, HW), pl.ds(0, Wp)] = h1_l.astype(jnp.bfloat16)
    pad_ref[pl.ds(PAD, HW), pl.ds(Wp, Wp)] = h1.astype(jnp.bfloat16)
    pad_ref[pl.ds(PAD - 1, HW), pl.ds(2 * Wp, Wp)] = h1_r.astype(jnp.bfloat16)

    acc = None
    for dy in (-1, 0, 1):                      # static unrolled: 3 matmuls, K = 3*Wp
        taps = pad_ref[pl.ds(PAD + dy * W, HW), :]                  # (HW, 3*Wp) bf16
        part = jnp.dot(taps, w2_ref[dy + 1], preferred_element_type=jnp.float32)
        acc = part if acc is None else acc + part
    h2 = jnp.maximum(acc * s2_ref[...] + b2_ref[...], 0.0)          # (HW, Wp) f32

    # ---- conv3 (1x1) + bn3 + residual + relu --------------------------------
    h3 = jnp.dot(h2.astype(jnp.bfloat16), w3_ref[...],
                 preferred_element_type=jnp.float32)
    h3 = h3 * s3_ref[...] + b3_ref[...]
    out = jnp.maximum(h3 + x_bf.astype(jnp.float32), 0.0)           # residual in f32
    o_ref[0] = out.astype(o_ref.dtype)


def bottleneck_flat(x_flat, w1, s1, b1, w2, s2, b2, w3, s3, b3, *, H, W):
    """Fused Bottleneck on lane-padded, channels-last bf16 activations.

    x_flat: (N, H*W, Cp) bf16 with Cp a multiple of 128; returns the same
    shape/dtype.  Chained blocks should stay in this layout to avoid
    NCHW<->NHWC transposes / pads / casts (extra HBM round trips) per block.
    """
    N, HW, Cp = x_flat.shape
    assert HW == H * W
    Wp = w1.shape[1]
    PAD = _round_up(W + 1, 16)   # halo rows; multiple of 16 keeps the per-dy
                                 # tap reads sublane-aligned when W % 8 == 0

    kern = functools.partial(bottleneck_kernel, H=H, W=W, PAD=PAD)

    # ---- per-step VMEM budget (incl. in-kernel temporaries), capped below the
    # ---- device capacity minus headroom --------------------------------------
    io_bytes = 2 * 2 * (HW * Cp * 2)                              # x/out bf16 blocks, 2x buffered
    w_bytes = 2 * 2 * (Cp * Wp + 3 * 3 * Wp * Wp + Wp * Cp)       # bf16 weights, 2x buffered
    sb_bytes = 2 * 6 * max(Wp, Cp) * 4                            # scale/bias f32
    scr_bytes = (HW + 2 * PAD) * 3 * Wp * 2                       # conv2 scratch (bf16)
    tmp_bytes = (10 * HW * Wp + 3 * HW * Cp) * 4                  # h1/h1_l/h1_r/col/acc/h2/taps, h3/out/x_f32
    est = io_bytes + w_bytes + sb_bytes + scr_bytes + tmp_bytes
    cap = _vmem_capacity_bytes()
    vmem_limit = int(min(max(2 * est, 32 * 1024 * 1024),
                         cap - 12 * 1024 * 1024))

    return pl.pallas_call(
        kern,
        out_shape=jax.ShapeDtypeStruct((N, HW, Cp), jnp.bfloat16),
        grid=(N,),
        in_specs=[
            pl.BlockSpec((1, HW, Cp), lambda n: (n, 0, 0)),          # x
            pl.BlockSpec((Cp, Wp), lambda n: (0, 0)),                # w1
            pl.BlockSpec((1, Wp), lambda n: (0, 0)),                 # s1
            pl.BlockSpec((1, Wp), lambda n: (0, 0)),                 # b1
            pl.BlockSpec((3, 3 * Wp, Wp), lambda n: (0, 0, 0)),      # w2 (tap-packed)
            pl.BlockSpec((1, Wp), lambda n: (0, 0)),                 # s2
            pl.BlockSpec((1, Wp), lambda n: (0, 0)),                 # b2
            pl.BlockSpec((Wp, Cp), lambda n: (0, 0)),                # w3
            pl.BlockSpec((1, Cp), lambda n: (0, 0)),                 # s3
            pl.BlockSpec((1, Cp), lambda n: (0, 0)),                 # b3
        ],
        out_specs=pl.BlockSpec((1, HW, Cp), lambda n: (n, 0, 0)),
        scratch_shapes=[pltpu.VMEM((HW + 2 * PAD, 3 * Wp), jnp.bfloat16)],
        compiler_params=pltpu.CompilerParams(
            dimension_semantics=("parallel",),
            vmem_limit_bytes=vmem_limit),
    )(x_flat, w1, s1, b1, w2, s2, b2, w3, s3, b3)


def bottleneck(x_nchw, w1_oihw, bn1, w2_oihw, bn2, w3_oihw, bn3, eps=1e-5):
    """Fused Bottleneck forward (eval-mode BN), PyTorch-style NCHW f32 interface.

    The NCHW<->flat transposes / pads / dtype casts below are one-off glue for
    parity with the PyTorch module; production callers should keep activations
    in the bottleneck_flat layout across blocks.
    """
    N, Cin, H, W = x_nchw.shape
    width = w1_oihw.shape[0]
    Cout = w3_oihw.shape[0]
    # Residual path assumptions of this kernel (default Bottleneck ctor args).
    assert Cin == Cout, "residual add requires inplanes == planes * expansion"
    assert w2_oihw.shape == (width, width, 3, 3), "only 3x3, stride=1, groups=1, dilation=1"

    HW = H * W
    LANE = 128
    Cp = _round_up(Cin, LANE)                  # lane-dense channels
    Wp = _round_up(width, LANE)                # lane-dense bottleneck width

    # ---- fold BN (running stats) into per-channel scale/bias, zero-padded ---
    def fold(p, n_pad):
        g, b, m, v = p
        s = g / jnp.sqrt(v + eps)
        t = b - m * s
        s = jnp.pad(s, (0, n_pad - s.shape[0])).reshape(1, n_pad).astype(jnp.float32)
        t = jnp.pad(t, (0, n_pad - t.shape[0])).reshape(1, n_pad).astype(jnp.float32)
        return s, t

    s1, b1 = fold(bn1, Wp)
    s2, b2 = fold(bn2, Wp)
    s3, b3 = fold(bn3, Cp)

    # ---- weights -> matmul layout, lane-padded, bf16 ------------------------
    w1 = jnp.pad(w1_oihw[:, :, 0, 0].T,
                 ((0, Cp - Cin), (0, Wp - width))).astype(jnp.bfloat16)
    w3 = jnp.pad(w3_oihw[:, :, 0, 0].T,
                 ((0, Wp - width), (0, Cp - Cout))).astype(jnp.bfloat16)
    w2 = jnp.transpose(w2_oihw, (2, 3, 1, 0))              # (kh, kw, in, out)
    w2 = jnp.pad(w2, ((0, 0), (0, 0), (0, Wp - width), (0, Wp - width)))
    w2 = w2.reshape(3, 3 * Wp, Wp).astype(jnp.bfloat16)    # K ordered [dx=-1, 0, +1]

    # ---- NCHW f32 -> (N, HW, Cp) bf16 ----------------------------------------
    x_flat = jnp.transpose(x_nchw, (0, 2, 3, 1)).reshape(N, HW, Cin)
    x_flat = jnp.pad(x_flat, ((0, 0), (0, 0), (0, Cp - Cin))).astype(jnp.bfloat16)

    out = bottleneck_flat(x_flat, w1, s1, b1, w2, s2, b2, w3, s3, b3, H=H, W=W)

    out = out[:, :, :Cout].astype(jnp.float32).reshape(N, H, W, Cout)
    return jnp.transpose(out, (0, 3, 1, 2))                # back to NCHW


def ref_bottleneck(x, w1, bn1, w2, bn2, w3, bn3, eps=1e-5,
                   matmul_dtype=jnp.float32, input_dtype=jnp.float32):
    """Pure-JAX NCHW reference mirroring the PyTorch forward (eval-mode BN).
    matmul_dtype/input_dtype=bf16 mirror the kernel's mixed-precision choices
    (the kernel additionally writes its output in bf16)."""
    x = x.astype(input_dtype).astype(jnp.float32)

    def bn(y, p):
        g, b, m, v = p
        inv = g / jnp.sqrt(v + eps)
        return y * inv[None, :, None, None] + (b - m * inv)[None, :, None, None]

    dn = ('NCHW', 'OIHW', 'NCHW')

    def conv(inp, w, pad):
        return lax.conv_general_dilated(
            inp.astype(matmul_dtype), w.astype(matmul_dtype), (1, 1), pad,
            dimension_numbers=dn, preferred_element_type=jnp.float32)

    out = jnp.maximum(bn(conv(x, w1, [(0, 0), (0, 0)]), bn1), 0.0)
    out = jnp.maximum(bn(conv(out, w2, [(1, 1), (1, 1)]), bn2), 0.0)
    out = bn(conv(out, w3, [(0, 0), (0, 0)]), bn3)
    return jnp.maximum(out + x, 0.0)


if __name__ == "__main__":
    key = jax.random.PRNGKey(0)
    N, H, W_sp = 2, 8, 8
    planes = 8
    inplanes = planes * 4            # == planes * expansion so the residual matches
    width = planes                   # base_width=64, groups=1 -> width = planes
    Cout = planes * 4
    eps = 1e-5

    ks = jax.random.split(key, 8)
    # PyTorch-layout (OIHW) weights, deterministic init.
    w1_oihw = jax.random.normal(ks[0], (width, inplanes, 1, 1), jnp.float32) * 0.1
    w2_oihw = jax.random.normal(ks[1], (width, width, 3, 3), jnp.float32) * 0.1
    w3_oihw = jax.random.normal(ks[2], (Cout, width, 1, 1), jnp.float32) * 0.1

    def bn_params(k, C):
        k1, k2, k3, k4 = jax.random.split(k, 4)
        g = 1.0 + 0.1 * jax.random.normal(k1, (C,), jnp.float32)
        b = 0.1 * jax.random.normal(k2, (C,), jnp.float32)
        m = 0.1 * jax.random.normal(k3, (C,), jnp.float32)
        v = jnp.abs(jax.random.normal(k4, (C,), jnp.float32)) + 0.5
        return g, b, m, v

    bn1 = bn_params(ks[3], width)
    bn2 = bn_params(ks[4], width)
    bn3 = bn_params(ks[5], Cout)
    x_nchw = jax.random.normal(ks[6], (N, inplanes, H, W_sp), jnp.float32)

    out = bottleneck(x_nchw, w1_oihw, bn1, w2_oihw, bn2, w3_oihw, bn3, eps=eps)
    out = jax.block_until_ready(out)

    # Tight check vs a reference that mirrors the kernel's precision choices
    # (bf16 input cast, bf16 MXU matmuls, f32 accumulation / BN / residual).
    # Tolerance covers up to half a bf16 ulp from the kernel's bf16 output cast.
    ref_mixed = ref_bottleneck(x_nchw, w1_oihw, bn1, w2_oihw, bn2, w3_oihw, bn3,
                               eps=eps, matmul_dtype=jnp.bfloat16,
                               input_dtype=jnp.bfloat16)
    err_mixed = float(jnp.max(jnp.abs(out - ref_mixed)))
    assert err_mixed < 2.5e-2, f"max abs error vs precision-matched reference: {err_mixed}"

    # Looser sanity check vs the pure-f32 PyTorch-equivalent math (bf16 weights,
    # activations and I/O deviate from f32 convolutions by design).
    ref_f32 = ref_bottleneck(x_nchw, w1_oihw, bn1, w2_oihw, bn2, w3_oihw, bn3,
                             eps=eps)
    err_f32 = float(jnp.max(jnp.abs(out - ref_f32)))
    assert err_f32 < 1e-1, f"max abs error vs f32 reference: {err_f32}"

    print("KERNEL_OK")
</pallas_src>

<mosaic_0001>
module attributes {stable_mosaic.version = 11 : i64} {
  func.func @bottleneck_kernel(%arg0: i32, %arg1: memref<1x64x128xbf16, #tpu.memory_space<vmem>>, %arg2: memref<128x128xbf16, #tpu.memory_space<vmem>>, %arg3: memref<1x128xf32, #tpu.memory_space<vmem>>, %arg4: memref<1x128xf32, #tpu.memory_space<vmem>>, %arg5: memref<3x384x128xbf16, #tpu.memory_space<vmem>>, %arg6: memref<1x128xf32, #tpu.memory_space<vmem>>, %arg7: memref<1x128xf32, #tpu.memory_space<vmem>>, %arg8: memref<128x128xbf16, #tpu.memory_space<vmem>>, %arg9: memref<1x128xf32, #tpu.memory_space<vmem>>, %arg10: memref<1x128xf32, #tpu.memory_space<vmem>>, %arg11: memref<1x64x128xbf16, #tpu.memory_space<vmem>>, %arg12: memref<96x384xbf16, #tpu.memory_space<vmem>>) attributes {dimension_semantics = [#tpu.dimension_semantics<parallel>], iteration_bounds = array<i64: 2>, scalar_prefetch = 0 : i64, scratch_operands = 1 : i64, tpu.core_type = #tpu.core_type<tc>, window_params = [{transform_indices = @transform_0, window_bounds = array<i64: 1, 64, 128>}, {pipeline_mode = #tpu.pipeline_mode<synchronous>, transform_indices = @transform_1, window_bounds = array<i64: 128, 128>}, {pipeline_mode = #tpu.pipeline_mode<synchronous>, transform_indices = @transform_2, window_bounds = array<i64: 1, 128>}, {pipeline_mode = #tpu.pipeline_mode<synchronous>, transform_indices = @transform_3, window_bounds = array<i64: 1, 128>}, {pipeline_mode = #tpu.pipeline_mode<synchronous>, transform_indices = @transform_4, window_bounds = array<i64: 3, 384, 128>}, {pipeline_mode = #tpu.pipeline_mode<synchronous>, transform_indices = @transform_5, window_bounds = array<i64: 1, 128>}, {pipeline_mode = #tpu.pipeline_mode<synchronous>, transform_indices = @transform_6, window_bounds = array<i64: 1, 128>}, {pipeline_mode = #tpu.pipeline_mode<synchronous>, transform_indices = @transform_7, window_bounds = array<i64: 128, 128>}, {pipeline_mode = #tpu.pipeline_mode<synchronous>, transform_indices = @transform_8, window_bounds = array<i64: 1, 128>}, {pipeline_mode = #tpu.pipeline_mode<synchronous>, transform_indices = @transform_9, window_bounds = array<i64: 1, 128>}, {transform_indices = @transform_10, window_bounds = array<i64: 1, 64, 128>}]} {
    %c0 = arith.constant 0 : index
    %c0_0 = arith.constant 0 : index
    %c0_1 = arith.constant 0 : index
    %0 = vector.load %arg1[%c0, %c0_0, %c0_1] : memref<1x64x128xbf16, #tpu.memory_space<vmem>>, vector<1x64x128xbf16>
    %1 = vector.shape_cast %0 : vector<1x64x128xbf16> to vector<64x128xbf16>
    %c0_2 = arith.constant 0 : index
    %c0_3 = arith.constant 0 : index
    %2 = vector.load %arg2[%c0_2, %c0_3] : memref<128x128xbf16, #tpu.memory_space<vmem>>, vector<128x128xbf16>
    %cst = arith.constant dense<0.000000e+00> : vector<64x128xf32>
    %3 = tpu.matmul %1, %2, %cst {dimension_numbers = #tpu.dot_dimension_numbers<[1], [0], [0], [1], [0, 0, 1, 1], [], []>} : vector<64x128xbf16>, vector<128x128xbf16>, vector<64x128xf32> -> vector<64x128xf32>
    %c0_4 = arith.constant 0 : index
    %c0_5 = arith.constant 0 : index
    %4 = vector.load %arg3[%c0_4, %c0_5] : memref<1x128xf32, #tpu.memory_space<vmem>>, vector<1x128xf32>
    %5 = vector.broadcast %4 : vector<1x128xf32> to vector<64x128xf32>
    %6 = arith.mulf %3, %5 : vector<64x128xf32>
    %c0_6 = arith.constant 0 : index
    %c0_7 = arith.constant 0 : index
    %7 = vector.load %arg4[%c0_6, %c0_7] : memref<1x128xf32, #tpu.memory_space<vmem>>, vector<1x128xf32>
    %8 = vector.broadcast %7 : vector<1x128xf32> to vector<64x128xf32>
    %9 = arith.addf %6, %8 : vector<64x128xf32>
    %cst_8 = arith.constant 0.000000e+00 : f32
    %10 = vector.broadcast %cst_8 : f32 to vector<64x128xf32>
    %11 = arith.maximumf %9, %10 : vector<64x128xf32>
    %12 = tpu.iota {dimensions = array<i32: 0>} : vector<64x128xi32>
    %c8_i32 = arith.constant 8 : i32
    %c0_i32 = arith.constant 0 : i32
    %13 = arith.cmpi eq, %c8_i32, %c0_i32 : i32
    %c1_i32 = arith.constant 1 : i32
    %14 = arith.select %13, %c1_i32, %c8_i32 : i32
    %15 = vector.broadcast %14 : i32 to vector<64x128xi32>
    %16 = arith.remsi %12, %15 : vector<64x128xi32>
    %c0_i32_9 = arith.constant 0 : i32
    %17 = vector.broadcast %c0_i32_9 : i32 to vector<64x128xi32>
    %18 = arith.cmpi ne, %16, %17 : vector<64x128xi32>
    %c0_i32_10 = arith.constant 0 : i32
    %19 = vector.broadcast %c0_i32_10 : i32 to vector<64x128xi32>
    %20 = arith.cmpi slt, %16, %19 : vector<64x128xi32>
    %c0_i32_11 = arith.constant 0 : i32
    %21 = arith.cmpi slt, %14, %c0_i32_11 : i32
    %22 = vector.broadcast %21 : i1 to vector<64x128xi1>
    %23 = vector.broadcast %22 : vector<64x128xi1> to vector<64x128xi1>
    %24 = arith.xori %20, %23 : vector<64x128xi1>
    %25 = arith.andi %24, %18 : vector<64x128xi1>
    %26 = vector.broadcast %14 : i32 to vector<64x128xi32>
    %27 = arith.addi %16, %26 : vector<64x128xi32>
    %28 = arith.select %25, %27, %16 : vector<64x128xi1>, vector<64x128xi32>
    %c7_i32 = arith.constant 7 : i32
    %29 = vector.broadcast %c7_i32 : i32 to vector<64x128xi32>
    %30 = arith.cmpi slt, %28, %29 : vector<64x128xi32>
    %cst_12 = arith.constant 0.000000e+00 : f32
    %31 = vector.broadcast %cst_12 : f32 to vector<64x128xf32>
    %32 = arith.select %30, %11, %31 : vector<64x128xi1>, vector<64x128xf32>
    %c0_i32_13 = arith.constant 0 : i32
    %33 = vector.broadcast %c0_i32_13 : i32 to vector<64x128xi32>
    %34 = arith.cmpi sgt, %28, %33 : vector<64x128xi32>
    %cst_14 = arith.constant 0.000000e+00 : f32
    %35 = vector.broadcast %cst_14 : f32 to vector<64x128xf32>
    %36 = arith.select %34, %11, %35 : vector<64x128xi1>, vector<64x128xf32>
    %cst_15 = arith.constant 0.000000e+00 : bf16
    %37 = vector.broadcast %cst_15 : bf16 to vector<17x384xbf16>
    %c0_16 = arith.constant 0 : index
    %c0_17 = arith.constant 0 : index
    %38 = vector.load %arg12[%c0_16, %c0_17] : memref<96x384xbf16, #tpu.memory_space<vmem>>, vector<17x384xbf16>
    tpu.vector_store %arg12[%c0_16, %c0_17], %37 {strides = array<i32>} : memref<96x384xbf16, #tpu.memory_space<vmem>>, vector<17x384xbf16>,
    %cst_18 = arith.constant 0.000000e+00 : bf16
    %39 = vector.broadcast %cst_18 : bf16 to vector<17x384xbf16>
    %c79 = arith.constant 79 : index
    %c0_19 = arith.constant 0 : index
    %40 = vector.load %arg12[%c79, %c0_19] : memref<96x384xbf16, #tpu.memory_space<vmem>>, vector<17x384xbf16>
    tpu.vector_store %arg12[%c79, %c0_19], %39 {strides = array<i32>} : memref<96x384xbf16, #tpu.memory_space<vmem>>, vector<17x384xbf16>,
    %41 = arith.truncf %32 : vector<64x128xf32> to vector<64x128xbf16>
    %c17 = arith.constant 17 : index
    %c0_20 = arith.constant 0 : index
    %42 = vector.load %arg12[%c17, %c0_20] : memref<96x384xbf16, #tpu.memory_space<vmem>>, vector<64x128xbf16>
    tpu.vector_store %arg12[%c17, %c0_20], %41 {strides = array<i32>} : memref<96x384xbf16, #tpu.memory_space<vmem>>, vector<64x128xbf16>,
    %43 = arith.truncf %11 : vector<64x128xf32> to vector<64x128xbf16>
    %c16 = arith.constant 16 : index
    %c128 = arith.constant 128 : index
    %44 = vector.load %arg12[%c16, %c128] : memref<96x384xbf16, #tpu.memory_space<vmem>>, vector<64x128xbf16>
    tpu.vector_store %arg12[%c16, %c128], %43 {strides = array<i32>} : memref<96x384xbf16, #tpu.memory_space<vmem>>, vector<64x128xbf16>,
    %45 = arith.truncf %36 : vector<64x128xf32> to vector<64x128xbf16>
    %c15 = arith.constant 15 : index
    %c256 = arith.constant 256 : index
    %46 = vector.load %arg12[%c15, %c256] : memref<96x384xbf16, #tpu.memory_space<vmem>>, vector<64x128xbf16>
    tpu.vector_store %arg12[%c15, %c256], %45 {strides = array<i32>} : memref<96x384xbf16, #tpu.memory_space<vmem>>, vector<64x128xbf16>,
    %c8 = arith.constant 8 : index
    %c0_21 = arith.constant 0 : index
    %47 = vector.load %arg12[%c8, %c0_21] : memref<96x384xbf16, #tpu.memory_space<vmem>>, vector<64x384xbf16>
    %c0_22 = arith.constant 0 : index
    %c0_23 = arith.constant 0 : index
    %c0_24 = arith.constant 0 : index
    %48 = vector.load %arg5[%c0_22, %c0_23, %c0_24] : memref<3x384x128xbf16, #tpu.memory_space<vmem>>, vector<1x384x128xbf16>
    %49 = vector.shape_cast %48 : vector<1x384x128xbf16> to vector<384x128xbf16>
    %cst_25 = arith.constant dense<0.000000e+00> : vector<64x128xf32>
    %50 = tpu.matmul %47, %49, %cst_25 {dimension_numbers = #tpu.dot_dimension_numbers<[1], [0], [0], [1], [0, 0, 1, 1], [], []>} : vector<64x384xbf16>, vector<384x128xbf16>, vector<64x128xf32> -> vector<64x128xf32>
    %c16_26 = arith.constant 16 : index
    %c0_27 = arith.constant 0 : index
    %51 = vector.load %arg12[%c16_26, %c0_27] : memref<96x384xbf16, #tpu.memory_space<vmem>>, vector<64x384xbf16>
    %c1 = arith.constant 1 : index
    %c0_28 = arith.constant 0 : index
    %c0_29 = arith.constant 0 : index
    %52 = vector.load %arg5[%c1, %c0_28, %c0_29] : memref<3x384x128xbf16, #tpu.memory_space<vmem>>, vector<1x384x128xbf16>
    %53 = vector.shape_cast %52 : vector<1x384x128xbf16> to vector<384x128xbf16>
    %cst_30 = arith.constant dense<0.000000e+00> : vector<64x128xf32>
    %54 = tpu.matmul %51, %53, %cst_30 {dimension_numbers = #tpu.dot_dimension_numbers<[1], [0], [0], [1], [0, 0, 1, 1], [], []>} : vector<64x384xbf16>, vector<384x128xbf16>, vector<64x128xf32> -> vector<64x128xf32>
    %55 = arith.addf %50, %54 : vector<64x128xf32>
    %c24 = arith.constant 24 : index
    %c0_31 = arith.constant 0 : index
    %56 = vector.load %arg12[%c24, %c0_31] : memref<96x384xbf16, #tpu.memory_space<vmem>>, vector<64x384xbf16>
    %c2 = arith.constant 2 : index
    %c0_32 = arith.constant 0 : index
    %c0_33 = arith.constant 0 : index
    %57 = vector.load %arg5[%c2, %c0_32, %c0_33] : memref<3x384x128xbf16, #tpu.memory_space<vmem>>, vector<1x384x128xbf16>
    %58 = vector.shape_cast %57 : vector<1x384x128xbf16> to vector<384x128xbf16>
    %cst_34 = arith.constant dense<0.000000e+00> : vector<64x128xf32>
    %59 = tpu.matmul %56, %58, %cst_34 {dimension_numbers = #tpu.dot_dimension_numbers<[1], [0], [0], [1], [0, 0, 1, 1], [], []>} : vector<64x384xbf16>, vector<384x128xbf16>, vector<64x128xf32> -> vector<64x128xf32>
    %60 = arith.addf %55, %59 : vector<64x128xf32>
    %c0_35 = arith.constant 0 : index
    %c0_36 = arith.constant 0 : index
    %61 = vector.load %arg6[%c0_35, %c0_36] : memref<1x128xf32, #tpu.memory_space<vmem>>, vector<1x128xf32>
    %62 = vector.broadcast %61 : vector<1x128xf32> to vector<64x128xf32>
    %63 = arith.mulf %60, %62 : vector<64x128xf32>
    %c0_37 = arith.constant 0 : index
    %c0_38 = arith.constant 0 : index
    %64 = vector.load %arg7[%c0_37, %c0_38] : memref<1x128xf32, #tpu.memory_space<vmem>>, vector<1x128xf32>
    %65 = vector.broadcast %64 : vector<1x128xf32> to vector<64x128xf32>
    %66 = arith.addf %63, %65 : vector<64x128xf32>
    %cst_39 = arith.constant 0.000000e+00 : f32
    %67 = vector.broadcast %cst_39 : f32 to vector<64x128xf32>
    %68 = arith.maximumf %66, %67 : vector<64x128xf32>
    %69 = arith.truncf %68 : vector<64x128xf32> to vector<64x128xbf16>
    %c0_40 = arith.constant 0 : index
    %c0_41 = arith.constant 0 : index
    %70 = vector.load %arg8[%c0_40, %c0_41] : memref<128x128xbf16, #tpu.memory_space<vmem>>, vector<128x128xbf16>
    %cst_42 = arith.constant dense<0.000000e+00> : vector<64x128xf32>
    %71 = tpu.matmul %69, %70, %cst_42 {dimension_numbers = #tpu.dot_dimension_numbers<[1], [0], [0], [1], [0, 0, 1, 1], [], []>} : vector<64x128xbf16>, vector<128x128xbf16>, vector<64x128xf32> -> vector<64x128xf32>
    %c0_43 = arith.constant 0 : index
    %c0_44 = arith.constant 0 : index
    %72 = vector.load %arg9[%c0_43, %c0_44] : memref<1x128xf32, #tpu.memory_space<vmem>>, vector<1x128xf32>
    %73 = vector.broadcast %72 : vector<1x128xf32> to vector<64x128xf32>
    %74 = arith.mulf %71, %73 : vector<64x128xf32>
    %c0_45 = arith.constant 0 : index
    %c0_46 = arith.constant 0 : index
    %75 = vector.load %arg10[%c0_45, %c0_46] : memref<1x128xf32, #tpu.memory_space<vmem>>, vector<1x128xf32>
    %76 = vector.broadcast %75 : vector<1x128xf32> to vector<64x128xf32>
    %77 = arith.addf %74, %76 : vector<64x128xf32>
    %78 = arith.extf %1 : vector<64x128xbf16> to vector<64x128xf32>
    %79 = arith.addf %77, %78 : vector<64x128xf32>
    %cst_47 = arith.constant 0.000000e+00 : f32
    %80 = vector.broadcast %cst_47 : f32 to vector<64x128xf32>
    %81 = arith.maximumf %79, %80 : vector<64x128xf32>
    %82 = arith.truncf %81 : vector<64x128xf32> to vector<64x128xbf16>
    %c0_48 = arith.constant 0 : index
    %c0_49 = arith.constant 0 : index
    %c0_50 = arith.constant 0 : index
    %83 = vector.load %arg11[%c0_48, %c0_49, %c0_50] : memref<1x64x128xbf16, #tpu.memory_space<vmem>>, vector<1x64x128xbf16>
    %84 = vector.shape_cast %83 : vector<1x64x128xbf16> to vector<64x128xbf16>
    %85 = vector.shape_cast %82 : vector<64x128xbf16> to vector<1x64x128xbf16>
    tpu.vector_store %arg11[%c0_48, %c0_49, %c0_50], %85 {strides = array<i32>} : memref<1x64x128xbf16, #tpu.memory_space<vmem>>, vector<1x64x128xbf16>,
    return
  }
  func.func @transform_0(%arg0: i32) -> (i32, i32, i32) {
    %c0_i32 = arith.constant 0 : i32
    %c0_i32_0 = arith.constant 0 : i32
    %c0_i32_1 = arith.constant 0 : i32
    return %arg0, %c0_i32, %c0_i32_0 : i32, i32, i32
  }
  func.func @transform_1(%arg0: i32) -> (i32, i32) {
    %c0_i32 = arith.constant 0 : i32
    %c0_i32_0 = arith.constant 0 : i32
    %c0_i32_1 = arith.constant 0 : i32
    return %c0_i32, %c0_i32_0 : i32, i32
  }
  func.func @transform_2(%arg0: i32) -> (i32, i32) {
    %c0_i32 = arith.constant 0 : i32
    %c0_i32_0 = arith.constant 0 : i32
    %c0_i32_1 = arith.constant 0 : i32
    return %c0_i32, %c0_i32_0 : i32, i32
  }
  func.func @transform_3(%arg0: i32) -> (i32, i32) {
    %c0_i32 = arith.constant 0 : i32
    %c0_i32_0 = arith.constant 0 : i32
    %c0_i32_1 = arith.constant 0 : i32
    return %c0_i32, %c0_i32_0 : i32, i32
  }
  func.func @transform_4(%arg0: i32) -> (i32, i32, i32) {
    %c0_i32 = arith.constant 0 : i32
    %c0_i32_0 = arith.constant 0 : i32
    %c0_i32_1 = arith.constant 0 : i32
    %c0_i32_2 = arith.constant 0 : i32
    return %c0_i32, %c0_i32_0, %c0_i32_1 : i32, i32, i32
  }
  func.func @transform_5(%arg0: i32) -> (i32, i32) {
    %c0_i32 = arith.constant 0 : i32
    %c0_i32_0 = arith.constant 0 : i32
    %c0_i32_1 = arith.constant 0 : i32
    return %c0_i32, %c0_i32_0 : i32, i32
  }
  func.func @transform_6(%arg0: i32) -> (i32, i32) {
    %c0_i32 = arith.constant 0 : i32
    %c0_i32_0 = arith.constant 0 : i32
    %c0_i32_1 = arith.constant 0 : i32
    return %c0_i32, %c0_i32_0 : i32, i32
  }
  func.func @transform_7(%arg0: i32) -> (i32, i32) {
    %c0_i32 = arith.constant 0 : i32
    %c0_i32_0 = arith.constant 0 : i32
    %c0_i32_1 = arith.constant 0 : i32
    return %c0_i32, %c0_i32_0 : i32, i32
  }
  func.func @transform_8(%arg0: i32) -> (i32, i32) {
    %c0_i32 = arith.constant 0 : i32
    %c0_i32_0 = arith.constant 0 : i32
    %c0_i32_1 = arith.constant 0 : i32
    return %c0_i32, %c0_i32_0 : i32, i32
  }
  func.func @transform_9(%arg0: i32) -> (i32, i32) {
    %c0_i32 = arith.constant 0 : i32
    %c0_i32_0 = arith.constant 0 : i32
    %c0_i32_1 = arith.constant 0 : i32
    return %c0_i32, %c0_i32_0 : i32, i32
  }
  func.func @transform_10(%arg0: i32) -> (i32, i32, i32) {
    %c0_i32 = arith.constant 0 : i32
    %c0_i32_0 = arith.constant 0 : i32
    %c0_i32_1 = arith.constant 0 : i32
    return %arg0, %c0_i32, %c0_i32_0 : i32, i32, i32
  }
}

</mosaic_0001>

<bundles_post_ra>
// kernel: tpu_custom_call.1
= control target key start
LH: loop header
LB: loop body
LE: loop exit
PB: predicated region body
PF: predicated region fallthrough
CT: control target
= control target key end

     0   :  { %s3956_s0 = inlined_call_operand.hbm [shape: bf16[2,64,128], index: 0, kind: input, shape index: {}]   ;;  %s3957_s1 = inlined_call_operand.hbm [shape: bf16[128,128], index: 1, kind: input, shape index: {}]   ;;  %s3958_s2 = inlined_call_operand.vmem [shape: f32[1,128], index: 2, kind: input, shape index: {}]   ;;  %s3959_s3 = inlined_call_operand.vmem [shape: f32[1,128], index: 3, kind: input, shape index: {}]   ;;  %s3960_s4 = inlined_call_operand.hbm [shape: bf16[3,384,128], index: 4, kind: input, shape index: {}]   ;;  %s3961_s5 = inlined_call_operand.vmem [shape: f32[1,128], index: 5, kind: input, shape index: {}]   ;;  %s3962_s6 = inlined_call_operand.vmem [shape: f32[1,128], index: 6, kind: input, shape index: {}]   ;;  %s3963_s7 = inlined_call_operand.hbm [shape: bf16[128,128], index: 7, kind: input, shape index: {}]   ;;  %s3964_s8 = inlined_call_operand.vmem [shape: f32[1,128], index: 8, kind: input, shape index: {}]   ;;  %s3965_s9 = inlined_call_operand.vmem [shape: f32[1,128], index: 9, kind: input, shape index: {}]   ;;  %s3966_s10 = inlined_call_operand.hbm [shape: bf16[2,64,128], index: 10, kind: output, shape index: {}]  }
   0x1   :  { %3973 = sst [smem:[#allocation18_spill]] %s3965_s9 }
   0x2   :  { %3974 = sst [smem:[#allocation19_spill]] %s3966_s10 }
   0x3   :  { %15 = vsyncpa [#allocation4], 0 }
   0x4   :  { %17 = vsyncpa [#allocation4 + $0x1], 0 }
   0x5   :  { %18 = vsyncpa [#allocation7], 0 }
   0x6   :  { %19 = vsyncpa [#allocation10], 0 }
   0x7   :  { %20 = vsyncpa [#allocation5], 0 }
   0x8   :  { %22 = vsyncpa [#allocation5 + $0x1], 0  ;;  %s3335_s13 = smov 0   ;;  %s3337_s14 = smov 0  }
   0x9   :  { %s3339_s15 = smov 0   ;;  %s3341_s16 = smov 0  }
   0xa LB: > { %3975 = sst [smem:[#allocation16_spill]] %s3256_s13  ;;  %s3356_s17 = sadd.s32 4294967295, %s3268_s16   ;;  %s3268_s16 = sphi %s3341_s16, %s4039_s16   ;;  %s3264_s15 = sphi %s3339_s15, %s4038_s15   ;;  %s3260_s14 = sphi %s3337_s14, %s4037_s14   ;;  %s3256_s13 = sphi %s3335_s13, %s4036_s13  }
   0xb   : > { %s2399_s18 = sadd.s32 4294967294, %s3268_s16   ;;  %p48_p0 = scmp.ne.s32.totalorder %s3260_s14, %s3256_s13 }
   0xc   : > { %p3967_p1 = scmp.eq.s32.totalorder %s3356_s17, 0  ;;  %p267_p3 = scmp.eq.s32.totalorder %s2399_s18, 1 }
   0xd   : > { %p2400_p5 = scmp.ge.s32.totalorder %s3268_s16, 1  ;;  %p274_p7 = scmp.lt.s32.totalorder %s3268_s16, 3 }
   0xe   : > { %p3365_p4 = por %p3967_p1, %p48_p0  ;;  %p3370_p6 = por %p267_p3, %p48_p0 }
   0xf   : > { %p3375_p8 = pnand %p2400_p5, %p274_p7  ;;  %s3270_s22 = smov [#allocation6]  }
  0x10   : > { %s3976_s19 = scalar_select %p3365_p4, 1, 0 }
  0x11   : > { %s3977_s20 = scalar_select %p3370_p6, 1, 0 }
  0x12   : > { %s3979_s21 = scalar_select %p3375_p8, 1, 0 }
  0x13   : > { %3978 = sst [smem:[#allocation17_spill]] %s3977_s20  ;;  %s286_s23 = sshll.u32 %s3270_s22, 4  ;;  %s3379_s23 = int_to_ptr.vmem [resolvable:$true] %s286_s23 }
  0x14   : > { %p2914_p9 = pneg %p3375_p8  ;;  %s3271_s25 = smov [#allocation8]  }
  0x15   : > { %s305_s26 = sshll.u32 %s3271_s25, 4  ;;  %s3272_s27 = smov [#allocation9]   ;;  %s3390_s26 = int_to_ptr.vmem [resolvable:$true] %s305_s26 }
  0x16   : > { %p3386_p11 = pnand %p2914_p9, %p3967_p1  ;;  %s3392_s28 = sshll.u32 %s3272_s27, 4  ;;  %s325_s28 = int_to_ptr.vmem [resolvable:$true] %s3392_s28 }
  0x17   : > { %s3080_s11 = scalar_lea.hbm %s3957_s1, 1024 }
  0x18   : > { %p3081_p12 = scmp.ne.s32.totalorder %s3957_s1, %s3080_s11  ;;  %p3402_p13 = pneg %p3386_p11 }
  0x19   : > { %p3087_p5 = scmp.lt.u32.totalorder %s3080_s11, %s3957_s1 }
  0x1a   : > { %p3083_p0 = pnand %p3402_p13, %p3081_p12 }
  0x1c   : > { %p3084_p3 = pneg %p3083_p0 }
  0x1e   : > { %p3089_p7 = pnand %p3087_p5, %p3084_p3 }
  0x20   : > { %3092 = shalt.err (!%p3089_p7)
}
  0x21   : > { %s3093_s29 = scalar_lea.vmem %s3379_s23, 1024  ;;  %p3101_p2 = scmp.lt.s32.totalorder %s3379_s23, %s3379_s23 }
  0x22   : > { %p3094_p9 = scmp.ne.s32.totalorder %s3379_s23, %s3093_s29  ;;  %p3102_p6 = scmp.lt.s32.totalorder %s3093_s29, %s3093_s29 }
  0x24   : > { %p3096_p10 = pnand %p3094_p9, %p3402_p13  ;;  %p3103_p12 = por %p3102_p6, %p3101_p2 }
  0x26   : > { %p3097_p1 = pneg %p3096_p10 }
  0x28   : > { %p3104_p0 = pnand %p3103_p12, %p3097_p1 }
  0x2a   : > { %3107 = shalt.err (!%p3104_p0)
}
  0x2b   : > { %s3273_s30 = smov 64   ;;  %s3274_s11 = smov 4  }
  0x2c   : > { %2917 = dma.hbm_to_vmem [thread:$0]  (!%p3386_p11), %s3957_s1, 1024, %s3379_s23, [#allocation7], %s3273_s30, %s3273_s30, %s3274_s11  }
  0x2d   : > { %s3108_s29 = scalar_lea.hbm %s3960_s4, 9216 }
  0x2e   : > { %p3109_p1 = scmp.ne.s32.totalorder %s3960_s4, %s3108_s29  ;;  %p3115_p10 = scmp.lt.u32.totalorder %s3108_s29, %s3960_s4 }
  0x30   : > { %p3111_p2 = pnand %p3109_p1, %p3402_p13 }
  0x32   : > { %p3112_p6 = pneg %p3111_p2 }
  0x34   : > { %p3117_p3 = pnand %p3115_p10, %p3112_p6 }
  0x36   : > { %3120 = shalt.err (!%p3117_p3)
}
  0x37   : > { %s3121_s23 = scalar_lea.vmem %s3390_s26, 9216  ;;  %p3129_p12 = scmp.lt.s32.totalorder %s3390_s26, %s3390_s26 }
  0x38   : > { %p3122_p5 = scmp.ne.s32.totalorder %s3390_s26, %s3121_s23  ;;  %p3130_p0 = scmp.lt.s32.totalorder %s3121_s23, %s3121_s23 }
  0x3a   : > { %p3124_p7 = pnand %p3122_p5, %p3402_p13  ;;  %p3131_p1 = por %p3130_p0, %p3129_p12 }
  0x3c   : > { %p3125_p9 = pneg %p3124_p7 }
  0x3e   : > { %p3132_p2 = pnand %p3131_p1, %p3125_p9 }
  0x40   : > { %3135 = shalt.err (!%p3132_p2)
}
  0x41   : > { %2920 = dma.hbm_to_vmem [thread:$0]  (!%p3386_p11), %s3960_s4, 9216, %s3390_s26, [#allocation7], %s3273_s30, %s3273_s30, %s3274_s11  }
  0x42   : > { %s3136_s12 = scalar_lea.hbm %s3963_s7, 1024 }
  0x43   : > { %p3137_p6 = scmp.ne.s32.totalorder %s3963_s7, %s3136_s12  ;;  %p3143_p5 = scmp.lt.u32.totalorder %s3136_s12, %s3963_s7 }
  0x45   : > { %p3139_p10 = pnand %p3137_p6, %p3402_p13 }
  0x47   : > { %p3140_p3 = pneg %p3139_p10 }
  0x49   : > { %p3145_p7 = pnand %p3143_p5, %p3140_p3 }
  0x4b   : > { %3148 = shalt.err (!%p3145_p7)
}
  0x4c   : > { %s3149_s23 = scalar_lea.vmem %s325_s28, 1024  ;;  %p3157_p1 = scmp.lt.s32.totalorder %s325_s28, %s325_s28 }
  0x4d   : > { %p3150_p9 = scmp.ne.s32.totalorder %s325_s28, %s3149_s23  ;;  %p3158_p2 = scmp.lt.s32.totalorder %s3149_s23, %s3149_s23 }
  0x4f   : > { %p3152_p12 = pnand %p3150_p9, %p3402_p13  ;;  %p3159_p4 = por %p3158_p2, %p3157_p1 }
  0x51   : > { %p3153_p0 = pneg %p3152_p12 }
  0x53   : > { %p3160_p8 = pnand %p3159_p4, %p3153_p0 }
  0x55   : > { %3163 = shalt.err (!%p3160_p8)
}
  0x56   : > { %2923 = dma.hbm_to_vmem [thread:$0]  (!%p3386_p11), %s3963_s7, 1024, %s325_s28, [#allocation10], %s3273_s30, %s3273_s30, %s3274_s11  }
  0x57   : > { %s3475_s22 = sadd.s32 1, %s3268_s16   ;;  %s35_s10 = sadd.s32 1, %s3264_s15 }
  0x58   : > { %s32_s24 = ssub.s32 %s3268_s16, %s3475_s22  ;;  %p42_p8 = scmp.ne.s32.totalorder %s3264_s15, %s3260_s14 }
  0x59   : > { %p33_p4 = scmp.eq.s32.totalorder %s32_s24, 0  ;;  %p43_p13 = scmp.eq.s32.totalorder %s3268_s16, 0 }
  0x5a   : > { %p2935_p6 = scmp.lt.s32.totalorder %s3268_s16, 2  ;;  %p3982_p3 = scmp.eq.s32.totalorder %s3356_s17, 1 }
  0x5b   : > { %s3485_s13 = scalar_select %p33_p4, %s3264_s15, %s35_s10  }
  0x5c   : > { %p44_p10 = por %p43_p13, %p42_p8  ;;  %p3489_p5 = por %p3982_p3, %p42_p8 }
  0x5d   : > { %s344_s12 = sand.u32 1, %s3264_s15   ;;  %s2525_s18 = sshll.u32 %s3268_s16, 9 }
  0x5e   : > { %s2405_s28 = sshll.u32 %s344_s12, 5  ;;  %s3498_s29 = scalar_lea.hbm %s3956_s0, %s2525_s18 }
  0x5f   : > { %s348_s23 = scalar_lea.vmem [#allocation3], %s2405_s28  ;;  %p3500_p11 = pnand %p2935_p6, %p44_p10 }
  0x60   : > { %s355_s26 = sshll.u32 %s348_s23, 4  ;;  %s3506_s24 = scalar_lea.sflag [#allocation4], %s344_s12  ;;  %s3504_s26 = int_to_ptr.vmem [resolvable:$true] %s355_s26 }
  0x61   : > { %s3164_s10 = scalar_lea.hbm %s3498_s29, 512  ;;  %p3166_p9 = pneg %p3500_p11 }
  0x62   : > { %p3165_p7 = scmp.ne.s32.totalorder %s3498_s29, %s3164_s10  ;;  %s3169_s25 = scalar_lea.hbm %s3956_s0, 1024 }
  0x63   : > { %p3170_p1 = scmp.lt.u32.totalorder %s3498_s29, %s3956_s0  ;;  %p3171_p2 = scmp.lt.u32.totalorder %s3169_s25, %s3164_s10 }
  0x64   : > { %p3167_p12 = pnand %p3166_p9, %p3165_p7  ;;  %p3173_p8 = scmp.lt.u32.totalorder %s3164_s10, %s3498_s29 }
  0x65   : > { %p3172_p4 = por %p3171_p2, %p3170_p1 }
  0x66   : > { %p3168_p0 = pneg %p3167_p12 }
  0x67   : > { %p3174_p13 = por %p3173_p8, %p3172_p4 }
  0x69   : > { %p3175_p6 = pnand %p3174_p13, %p3168_p0 }
  0x6b   : > { %3178 = shalt.err (!%p3175_p6)
}
  0x6c   : > { %s3179_s12 = scalar_lea.vmem %s3504_s26, 512  ;;  %s3275_s18 = smov [#allocation3]  }
  0x6d   : > { %p3180_p10 = scmp.ne.s32.totalorder %s3504_s26, %s3179_s12  ;;  %s3184_s28 = sshll.u32 %s3275_s18, 4  ;;  %s3185_s28 = int_to_ptr.vmem [resolvable:$false] %s3184_s28 }
  0x6e   : > { %s3186_s27 = scalar_lea.vmem %s3185_s28, 1024  ;;  %p3187_p12 = scmp.lt.s32.totalorder %s3504_s26, %s3185_s28 }
  0x6f   : > { %p3182_p3 = pnand %p3180_p10, %p3166_p9  ;;  %p3188_p1 = scmp.lt.s32.totalorder %s3186_s27, %s3179_s12 }
  0x71   : > { %p3183_p7 = pneg %p3182_p3  ;;  %p3189_p2 = por %p3188_p1, %p3187_p12 }
  0x73   : > { %p3190_p4 = pnand %p3189_p2, %p3183_p7 }
  0x75   : > { %3193 = shalt.err (!%p3190_p4)
}
  0x76   : > { %2927 = dma.hbm_to_vmem [thread:$0]  (!%p3500_p11), %s3498_s29, 512, %s3504_s26, %s3506_s24, %s3273_s30, %s3273_s30, %s3274_s11  }
  0x77   : > { %p3985_p9 = scmp.ne.s32.totalorder %s3979_s21, 0 }
  0x78   : > { %s3540_s10 = sand.u32 (!%p3985_p9), 1, %s3260_s14   ;;  %p3986_p0 = scmp.ne.s32.totalorder (!%p3985_p9), %s3976_s19, 0 }
  0x79   : > { %367 = sbr.rel (%p3985_p9) target bundleno = 958 (0x3be), region = 60  ;;  %s2409_s25 = sshll.u32 (!%p3985_p9), %s3540_s10, 5 }
  0x7a   : > { %s370_s23 = scalar_lea.sflag (!%p3985_p9), [#allocation4], %s3540_s10  ;;  %s3546_s9 = scalar_lea.vmem (!%p3985_p9), [#allocation3], %s2409_s25 }
  0x80   : > { %3239 = dma.done.wait (%p3986_p0), %s370_s23, 512  }
  0x81   : > { %3241 = vsyncadd (%p3986_p0), %s370_s23, 4294966784  ;;  %p3987_p11 = scmp.eq.s32.totalorder %s3356_s17, 0 }
  0x83   : > { %3243 = dma.done.wait (%p3987_p11), [#allocation7], 10240   ;;  %p3988_p8 = pmov %p3987_p11 }
  0x85   : > { %3245 = vsyncadd (%p3988_p8), [#allocation7], 4294957056  ;;  %p3989_p13 = pmov %p3988_p8 }
  0x86   : > { %p3990_p6 = pmov %p3988_p8 }
  0x87   : > { %3247 = dma.done.wait (%p3989_p13), [#allocation10], 1024  }
  0x88   : > { %3249 = vsyncadd (%p3990_p6), [#allocation10], 4294966272  ;;  %v2980_v0 = vld [vmem:[#allocation6] sm:$0xff]   ;;  %v2981_v1 = vld [vmem:[#allocation6 + $0x8] sm:$0xff]   ;;  %v3276_v23 = vmov 0   ;;  %vm762_vm0 = vcmask 1040384   ;;  %v622_v53 = vlaneseq }
  0x89   : > { %2738 = vmatprep.subr.bf16.mxu0 %v2980_v0  ;;  %v2982_v2 = vld [vmem:[#allocation6 + $0x10] sm:$0xff]   ;;  %v2983_v3 = vld [vmem:[#allocation6 + $0x18] sm:$0xff]   ;;  %v423_v4 = vld [vmem:[%s3546_s9] sm:$0xff]   ;;  %759 = vst [vmem:[#allocation2] sm:$0xff] %v3276_v23  ;;  %vm763_vm1 = vsmask.f32 256 }
  0x8a   : > { %2739 = vmatpush3.bf16.msra.mxu0 %v2980_v0  ;;  %v2984_v5 = vld [vmem:[#allocation6 + $0x20] sm:$0xff]   ;;  %2754 = vmatprep.mubr.bf16.mxu0 %v423_v4  ;;  %v2994_v8 = vld [vmem:[#allocation8 + $0x108] sm:$0xff]   ;;  %v2986_v10 = vld [vmem:[#allocation6 + $0x30] sm:$0xff]   ;;  %761 = vst [vmem:[#allocation2 + $0x10] sm:$0xff] %v3276_v23  ;;  %vm774_vm3 = vcmask 1047559   ;;  %v623_v54 = vshrl.u32 %v622_v53, 7 }
  0x8b   : > { %2740 = vmatprep.subr.bf16.mxu0 %v2981_v1  ;;  %v2992_v6 = vld [vmem:[#allocation8 + $0x100] sm:$0xff]   ;;  %v2985_v9 = vld [vmem:[#allocation6 + $0x28] sm:$0xff]   ;;  %v2987_v11 = vld [vmem:[#allocation6 + $0x38] sm:$0xff]   ;;  %760 = vst [vmem:[#allocation2 + $0x8] sm:$0xff] %v3276_v23  ;;  %vm775_vm4 = vsmask.f32 7966 }
  0x8c   : > { %v2993_v7 = vld [vmem:[#allocation8 + $0xc0] sm:$0xff]   ;;  %2570 = vmatprep.subr.bf16.mxu1 %v2992_v6  ;;  %v425_v12 = vld [vmem:[%s3546_s9 + $0x8] sm:$0xff]   ;;  %v427_v13 = vld [vmem:[%s3546_s9 + $0x10] sm:$0xff]   ;;  %786 = vst [vmem:[#allocation2 + $0x78] sm:$0xff] %v3276_v23  ;;  %v625_v55 = vadd.s32 16, %v623_v54  ;;  %v626_v56 = vadd.s32 24, %v623_v54 }
  0x8d   : > { %2571 = vmatpush3.bf16.msra.mxu1 %v2993_v7  ;;  %v429_v14 = vld [vmem:[%s3546_s9 + $0x18] sm:$0xff]   ;;  %v2995_v15 = vld [vmem:[#allocation8 + $0xc8] sm:$0xff]   ;;  %v2996_v16 = vld [vmem:[#allocation8 + $0x140] sm:$0xff]   ;;  %787 = vst [vmem:[#allocation2 + $0x80] sm:$0xff] %v3276_v23  ;;  %v624_v58 = vadd.s32 8, %v623_v54  ;;  %v635_v59 = vand.u32 7, %v623_v54 }
  0x8e   : > { %2741 = vmatpush3.bf16.msra.mxu0 %v2981_v1  ;;  %2572 = vmatprep.subr.bf16.mxu1 %v2994_v8  ;;  %v2997_v17 = vld [vmem:[#allocation8 + $0x110] sm:$0xff]   ;;  %v2999_v19 = vld [vmem:[#allocation8 + $0x148] sm:$0xff]   ;;  %v3000_v20 = vld [vmem:[#allocation8 + $0x118] sm:$0xff]   ;;  %788 = vst [vmem:[#allocation2 + $0x88] sm:$0xff] %v3276_v23  ;;  %v649_v57 = vand.u32 7, %v625_v55  ;;  %v656_v61 = vand.u32 7, %v626_v56 }
  0x8f   : > { %2742 = vmatprep.subr.bf16.mxu0 %v2982_v2  ;;  %v2998_v18 = vld [vmem:[#allocation8 + $0xd0] sm:$0xff]   ;;  %v3001_v21 = vld [vmem:[#allocation8 + $0xd8] sm:$0xff]   ;;  %v3003_v24 = vld [vmem:[#allocation8 + $0x120] sm:$0xff]   ;;  %v629_v62 = vadd.s32 48, %v623_v54  ;;  %vm3607_vm8 = vcmp.lt.s32.totalorder %v635_v59, 7  ;;  %vm3611_vm9 = vcmp.gt.s32.totalorder %v635_v59, 0 }
  0x90   : > { %v3002_v22 = vld [vmem:[#allocation8 + $0x150] sm:$0xff]   ;;  %vm3565_vm2 = vmand %vm762_vm0, %vm763_vm1  ;;  %v765_v26 = vld [vmem:[#allocation2 + $0x18] sm:$0x1]  ;;  %vm3598_vm6 = vcmp.lt.s32.totalorder %v649_v57, 7  ;;  %vm3603_vm7 = vcmp.gt.s32.totalorder %v649_v57, 0  ;;  %vm3616_vm10 = vcmp.lt.s32.totalorder %v656_v61, 7 }
  0x91   : > { %2573 = vmatpush3.bf16.msra.mxu1 %v2995_v15  ;;  %v768_v27 = vld [vmem:[#allocation2 + $0x20] sm:$0x1]  ;;  %v766_v28 = vsel %vm3565_vm2, 0, %v765_v26  ;;  %v3004_v30 = vld [vmem:[#allocation8 + $0xe0] sm:$0xff]   ;;  %v3005_v31 = vld [vmem:[#allocation8 + $0x158] sm:$0xff]   ;;  %vm3625_vm11 = vcmp.gt.s32.totalorder %v656_v61, 0 }
  0x92   : > { %2743 = vmatpush3.bf16.msra.mxu0 %v2982_v2  ;;  %2574 = vmatprep.subr.bf16.mxu1 %v2997_v17  ;;  %v769_v29 = vsel %vm3565_vm2, 0, %v768_v27  ;;  %767 = vst [vmem:[#allocation2 + $0x18] sm:$0x1] %v766_v28  ;;  %v3006_v32 = vld [vmem:[#allocation8 + $0x128] sm:$0xff]   ;;  %v3008_v34 = vld [vmem:[#allocation8 + $0x160] sm:$0xff]   ;;  %vm3573_vm5 = vmand %vm774_vm3, %vm775_vm4  ;;  %v642_v2 = vand.u32 7, %v624_v58 }
  0x93   : > { %2744 = vmatprep.subr.bf16.mxu0 %v2983_v3  ;;  %770 = vst [vmem:[#allocation2 + $0x20] sm:$0x1] %v769_v29  ;;  %v3007_v33 = vld [vmem:[#allocation8 + $0xe8] sm:$0xff]   ;;  %v771_v35 = vld [vmem:[#allocation2 + $0x28] sm:$0x1]  ;;  %v3009_v42 = vld [vmem:[#allocation8 + $0x130] sm:$0xff]  }
  0x94   : > { %v777_v37 = vld [vmem:[#allocation2 + $0x60] sm:$0x80]  ;;  %v772_v38 = vsel %vm3565_vm2, 0, %v771_v35  ;;  %v783_v40 = vld [vmem:[#allocation2 + $0x70] sm:$0x80]  ;;  %v3011_v44 = vld [vmem:[#allocation8 + $0x168] sm:$0xff]  }
  0x95   : > { %2575 = vmatpush3.bf16.msra.mxu1 %v2998_v18  ;;  %v778_v39 = vsel %vm3573_vm5, 0, %v777_v37  ;;  %773 = vst [vmem:[#allocation2 + $0x28] sm:$0x1] %v772_v38  ;;  %v784_v41 = vsel %vm3573_vm5, 0, %v783_v40  ;;  %v3010_v43 = vld [vmem:[#allocation8 + $0xf0] sm:$0xff]   ;;  %v3012_v45 = vld [vmem:[#allocation8 + $0x138] sm:$0xff]  }
  0x96   : > { %2745 = vmatpush3.bf16.msra.mxu0 %v2983_v3  ;;  %2576 = vmatprep.subr.bf16.mxu1 %v3000_v20  ;;  %779 = vst [vmem:[#allocation2 + $0x60] sm:$0x80] %v778_v39  ;;  %785 = vst [vmem:[#allocation2 + $0x70] sm:$0x80] %v784_v41  ;;  %v780_v46 = vld [vmem:[#allocation2 + $0x68] sm:$0x80] }
  0x97   : > { %2746 = vmatprep.subr.bf16.mxu0 %v2984_v5  ;;  %v781_v47 = vsel %vm3573_vm5, 0, %v780_v46  ;;  %v3013_v48 = vld [vmem:[#allocation8 + $0xf8] sm:$0xff]   ;;  %v3014_v49 = vld [vmem:[#allocation8 + $0x170] sm:$0xff]   ;;  %v3015_v50 = vld [vmem:[#allocation8 + $0x40] sm:$0xff]   ;;  %v3622_v17 = vadd.s32 40, %v623_v54  ;;  %vm3630_vm12 = vcmp.lt.s32.totalorder %v642_v2, 7 }
  0x98   : > { %782 = vst [vmem:[#allocation2 + $0x68] sm:$0x80] %v781_v47  ;;  %v3017_v51 = vld [vmem:[#allocation8 + $0x178] sm:$0xff]   ;;  %v3585_v52 = vld [vmem:[#allocation8 + $0x80] sm:$0xff]   ;;  %v3591_v60 = vld [vmem:[%s3958_s2] ss:$0 sm:$0xff] }
  0x99   : > { %2577 = vmatpush3.bf16.msra.mxu1 %v3001_v21  ;;  %v3596_v0 = vld [vmem:[%s3959_s3] ss:$0 sm:$0xff]  ;;  %vm3635_vm13 = vcmp.gt.s32.totalorder %v642_v2, 0  ;;  %vm829_vm14 = vcmask 1047552   ;;  %vm830_vm15 = vsmask.f32 7938 }
  0x9a   : > { %2747 = vmatpush3.bf16.msra.mxu0 %v2984_v5  ;;  %2578 = vmatprep.subr.bf16.mxu1 %v3003_v24  ;;  %vm853_vm3 = vsmask.f32 7424  ;;  %v890_v7 = vld [vmem:[#allocation2 + $0x10] sm:$0x80]  ;;  %v3019_v40 = vld [vmem:[#allocation8 + $0x8] sm:$0xff]   ;;  %s4029_s19 = sld [smem:[#allocation18_spill]] }
  0x9b   : > { %2748 = vmatprep.subr.bf16.mxu0 %v2985_v9  ;;  %s3897_s21 = scalar_lea.vmem [#allocation11], %s2409_s25  ;;  %s4030_s29 = sld [smem:[#allocation19_spill]] }
  0x9c   : > { %s2297_s25 = sshll.u32 %s3897_s21, 4  ;;  %s2284_s24 = scalar_lea.sflag [#allocation5], %s3540_s10  ;;  %s3905_s25 = int_to_ptr.vmem [resolvable:$true] %s2297_s25 }
  0x9d   : > { %2579 = vmatpush3.bf16.msra.mxu1 %v3004_v30  ;;  %s3277_s12 = smov [#allocation11]  }
  0x9e   : > { %2749 = vmatpush3.bf16.msra.mxu0 %v2985_v9  ;;  %2580 = vmatprep.subr.bf16.mxu1 %v3006_v32  ;;  %s3198_s18 = sshll.u32 %s3277_s12, 4  ;;  %s3199_s18 = int_to_ptr.vmem [resolvable:$false] %s3198_s18 }
  0x9f   : > { %2750 = vmatprep.subr.bf16.mxu0 %v2986_v10  ;;  %s3200_s28 = scalar_lea.vmem %s3199_s18, 1024  ;;  %p3201_p12 = scmp.lt.s32.totalorder %s3905_s25, %s3199_s18 }
  0xa1   : > { %2581 = vmatpush3.bf16.msra.mxu1 %v3007_v33  ;;  %v670_v33 = vand.u32 7, %v3622_v17 }
  0xa2   : > { %2751 = vmatpush3.bf16.msra.mxu0 %v2986_v10  ;;  %2582 = vmatprep.subr.bf16.mxu1 %v3009_v42 }
  0xa3   : > { %2752 = vmatprep.subr.bf16.mxu0 %v2987_v11 }
  0xa5   : > { %2583 = vmatpush3.bf16.msra.mxu1 %v3010_v43 }
  0xa6   : > { %2753 = vmatpush3.bf16.msra.mxu0 %v2987_v11  ;;  %2584 = vmatprep.subr.bf16.mxu1 %v3012_v45  ;;  %v677_v11 = vand.u32 7, %v629_v62  ;;  %v3022_v62 = vld [vmem:[#allocation8 + $0x10] sm:$0xff]  }
  0xa7   : > { %2762 = vmatprep.subr.bf16.mxu0 %v2996_v16 }
  0xa8   : > { %vm3642_vm0 = vcmp.lt.s32.totalorder %v677_v11, 7  ;;  %vm3653_vm4 = vcmp.gt.s32.totalorder %v677_v11, 0 }
  0xa9   : > { %2755 = vmatmul.mubr.bf16.vlgmr.msra.gmra.mrb[0].mxu0 %v425_v12  ;;  %2585 = vmatpush3.bf16.msra.mxu1 %v3013_v48  ;;  %v627_v12 = vadd.s32 32, %v623_v54 }
  0xaa   : > { %2758 = vmatprep.mubr.bf16.mxu0 %v427_v13  ;;  %2763 = vmatpush3.bf16.msra.mxu0 %v2996_v16  ;;  %v630_v16 = vadd.s32 56, %v623_v54 }
  0xab   : > { %2764 = vmatprep.subr.bf16.mxu0 %v2999_v19  ;;  %2622 = vmatprep.subr.bf16.mxu1 %v3015_v50  ;;  %v663_v28 = vand.u32 7, %v627_v12  ;;  %v838_v50 = vld [vmem:[#allocation2 + $0x78] sm:$0x1] }
  0xac   : > { %v684_v32 = vand.u32 7, %v630_v16  ;;  %v832_v16 = vld [vmem:[#allocation2 + $0x18] sm:$0xff] }
  0xae   : > { %2765 = vmatpush3.bf16.msra.mxu0 %v2999_v19 }
  0xaf   : > { %2766 = vmatprep.subr.bf16.mxu0 %v3002_v22 }
  0xb1   : > { %2759 = vmatmul.mubr.bf16.gmra.mrb[4].mxu0 %v429_v14 }
  0xb2   : > { %2767 = vmatpush3.bf16.msra.mxu0 %v3002_v22 }
  0xb3   : > { %2768 = vmatprep.subr.bf16.mxu0 %v3005_v31 }
  0xb6   : > { %2769 = vmatpush3.bf16.msra.mxu0 %v3005_v31 }
  0xb7   : > { %2770 = vmatprep.subr.bf16.mxu0 %v3008_v34 }
  0xba   : > { %2771 = vmatpush3.bf16.msra.mxu0 %v3008_v34 }
  0xbb   : > { %2772 = vmatprep.subr.bf16.mxu0 %v3011_v44 }
  0xbe   : > { %2773 = vmatpush3.bf16.msra.mxu0 %v3011_v44 }
  0xbf   : > { %2774 = vmatprep.subr.bf16.mxu0 %v3014_v49 }
  0xc2   : > { %2775 = vmatpush3.bf16.msra.mxu0 %v3014_v49 }
  0xc3   : > { %2776 = vmatprep.subr.bf16.mxu0 %v3017_v51 }
  0xc6   : > { %2777 = vmatpush3.bf16.msra.mxu0 %v3017_v51 }
  0xc7   : > { %2786 = vmatprep.subr.bf16.mxu0 %v3585_v52 }
 0x17c   : > { %v2756_v63 = vpop.f32.mrb[0].mxu0 }
 0x17d   : > { %v593_v3 = vmul.f32 %v2756_v63, %v3591_v60  ;;  %v553_v5 = vpop.f32.mrb[1].mxu0 }
 0x17e   : > { %v591_v8 = vmul.f32 %v3591_v60, %v553_v5  ;;  %v2757_v9 = vpop.f32.mrb[2].mxu0 }
 0x17f   : > { %v608_v13 = vadd.f32 %v3596_v0, %v593_v3  ;;  %v594_v14 = vmul.f32 %v2757_v9, %v3591_v60  ;;  %v556_v15 = vpop.f32.mrb[3].mxu0 }
 0x180   : > { %v606_v18 = vadd.f32 %v3596_v0, %v591_v8  ;;  %v592_v20 = vmul.f32 %v3591_v60, %v556_v15 }
 0x181   : > { %v616_v22 = vmax.f32 %v608_v13, 0.0  ;;  %v609_v23 = vadd.f32 %v3596_v0, %v594_v14 }
 0x182   : > { %v614_v26 = vmax.f32 %v606_v18, 0.0  ;;  %v607_v27 = vadd.f32 %v3596_v0, %v592_v20  ;;  %v3023_v18 = vld [vmem:[#allocation8 + $0x88] sm:$0xff]  }
 0x183   : > { %v737_v29 = vsel %vm3598_vm6, %v616_v22, 0.0  ;;  %v617_v30 = vmax.f32 %v609_v23, 0.0  ;;  %v753_v34 = vsel %vm3603_vm7, %v616_v22, 0.0  ;;  %vm3670_vm6 = vcmp.lt.s32.totalorder %v663_v28, 7 }
 0x184   : > { %v735_v35 = vsel %vm3607_vm8, %v614_v26, 0.0  ;;  %v751_v37 = vsel %vm3611_vm9, %v614_v26, 0.0  ;;  %v615_v38 = vmax.f32 %v607_v27, 0.0  ;;  %v2760_v39 = vpop.f32.mrb[4].mxu0  ;;  %vm3674_vm7 = vcmp.gt.s32.totalorder %v663_v28, 0  ;;  %v3018_v28 = vld [vmem:[#allocation8 + $0x48] sm:$0xff]  }
 0x185   : > { %v738_v41 = vsel %vm3616_vm10, %v617_v30, 0.0  ;;  %v754_v42 = vsel %vm3625_vm11, %v617_v30, 0.0  ;;  %v3661_v43 = vpack.c.bf16 %v617_v30, %v616_v22  ;;  %v597_v44 = vmul.f32 %v2760_v39, %v3591_v60  ;;  %v569_v45 = vpop.f32.mrb[5].mxu0  ;;  %vm831_vm11 = vmand %vm829_vm14, %vm830_vm15  ;;  %v3016_v22 = vld [vmem:[#allocation8] sm:$0xff]  }
 0x186   : > { %v790_v46 = vpack.c.bf16 %v738_v41, %v737_v29  ;;  %v3664_v47 = vpack.c.bf16 %v754_v42, %v753_v34  ;;  %v736_v48 = vsel %vm3630_vm12, %v615_v38, 0.0  ;;  %v752_v49 = vsel %vm3635_vm13, %v615_v38, 0.0  ;;  %v2761_v53 = vpop.f32.mrb[6].mxu0 }
 0x187   : > { %v789_v54 = vpack.c.bf16 %v736_v48, %v735_v35  ;;  %v3678_v55 = vpack.c.bf16 %v615_v38, %v614_v26  ;;  %v849_v56 = vpack.c.bf16 %v752_v49, %v751_v37  ;;  %v612_v57 = vadd.f32 %v3596_v0, %v597_v44  ;;  %v572_v58 = vpop.f32.mrb[7].mxu0 }
 0x188   : > { %v801_v59 = vshrl.u32 %v790_v46, 16  ;;  %v862_v61 = vshll.u32 %v3664_v47, 16  ;;  %vm3682_vm8 = vcmp.lt.s32.totalorder %v684_v32, 7  ;;  %vm3686_vm9 = vcmp.gt.s32.totalorder %v684_v32, 0 }
 0x189   : > { %v804_v1 = vshll.u32 %v790_v46, 16  ;;  %v794_v2 = vshrl.u32 %v789_v54, 16  ;;  %v797_v3 = vshll.u32 %v789_v54, 16  ;;  %845 = vst [vmem:[#allocation2 + $0x20] sm:$0xff] %v3678_v55  ;;  %v855_v4 = vshll.u32 %v849_v56, 16  ;;  %1191 = vmatprep.mubr.bf16.mxu1 %v3678_v55  ;;  %v3021_v46 = vld [vmem:[#allocation8 + $0x50] sm:$0xff]  }
 0x18a   : > { %vm1304_vm10 = vcmask 1043456   ;;  %v3692_v5 = vrot.slane %v801_v59, 7  ;;  %v858_v6 = vshrl.u32 %v849_v56, 16  ;;  %v620_v8 = vmax.f32 %v612_v57, 0.0 }
 0x18b   : > { %v595_v9 = vmul.f32 %v3591_v60, %v569_v45  ;;  %v796_v10 = vrot.slane %v794_v2, 7  ;;  %v857_v11 = vrot.slane %v855_v4, 1  ;;  %v598_v12 = vmul.f32 %v2761_v53, %v3591_v60  ;;  %v3024_v4 = vld [vmem:[#allocation8 + $0x58] sm:$0xff]  }
 0x18c   : > { %v596_v13 = vmul.f32 %v3591_v60, %v572_v58  ;;  %v806_v14 = vor.u32 %v804_v1, %v3692_v5  ;;  %v3698_v15 = vrot.slane %v862_v61, 1  ;;  %vm3702_vm12 = vcmp.lt.s32.totalorder %v670_v33, 7 }
 0x18d   : > { %vm3706_vm13 = vcmp.gt.s32.totalorder %v670_v33, 0  ;;  %v799_v19 = vor.u32 %v797_v3, %v796_v10  ;;  %v860_v20 = vor.u32 %v858_v6, %v857_v11  ;;  %v891_v60 = vsel %vm3573_vm5, %v857_v11, %v890_v7  ;;  %vm3765_vm5 = vmand %vm829_vm14, %vm853_vm3  ;;  %v897_v11 = vld [vmem:[#allocation2 + $0x70] sm:$0xff] }
 0x18e   : > { %v610_v21 = vadd.f32 %v3596_v0, %v595_v9  ;;  %v807_v23 = vsel %vm763_vm1, %v796_v10, %v806_v14  ;;  %892 = vst [vmem:[#allocation2 + $0x10] sm:$0x80] %v891_v60  ;;  %v741_v24 = vsel %vm3642_vm0, %v620_v8, 0.0  ;;  %v613_v26 = vadd.f32 %v3596_v0, %v598_v12  ;;  %v3038_v10 = vld [vmem:[#allocation8 + $0xb0] sm:$0xff]  }
 0x18f   : > { %v611_v27 = vadd.f32 %v3596_v0, %v596_v13  ;;  %v3718_v29 = vsel %vm831_vm11, %v799_v19, %v832_v16  ;;  %v3722_v36 = vsel %vm853_vm3, %v860_v20, %v3698_v15  ;;  %v757_v30 = vsel %vm3653_vm4, %v620_v8, 0.0 }
 0x190   : > { %v618_v32 = vmax.f32 %v610_v21, 0.0  ;;  %834 = vst [vmem:[#allocation2 + $0x18] sm:$0xff] %v3718_v29  ;;  %893 = vst [vmem:[#allocation2 + $0x28] sm:$0xff] %v3722_v36  ;;  %v621_v31 = vmax.f32 %v613_v26, 0.0  ;;  %v1309_v34 = vrot.slane %v3678_v55, 4  ;;  %1192 = vmatmul.mubr.bf16.vlgmr.msra.gmra.mrb[0].mxu1 %v3718_v29  ;;  %2778 = vmatprep.mubr.bf16.mxu0 %v3722_v36  ;;  %v3732_v0 = vrot.slane %v3661_v43, 4 }
 0x191   : > { %v619_v33 = vmax.f32 %v611_v27, 0.0  ;;  %v866_v35 = vshrl.u32 %v3664_v47, 16  ;;  %v1306_v39 = vrot.slane %v3718_v29, 4  ;;  %2623 = vmatpush3.bf16.msra.mxu1 %v3016_v22  ;;  %1199 = vmatprep.mubr.bf16.mxu1 %v3661_v43  ;;  %v3752_v54 = vrot.slane %v807_v23, 4  ;;  %v3025_v22 = vld [vmem:[#allocation8 + $0x18] sm:$0xff]   ;;  %v3027_v26 = vld [vmem:[#allocation8 + $0x60] sm:$0xff]  }
 0x192   : > { %v739_v37 = vsel %vm3670_vm6, %v618_v32, 0.0  ;;  %v755_v38 = vsel %vm3674_vm7, %v618_v32, 0.0  ;;  %v742_v41 = vsel %vm3682_vm8, %v621_v31, 0.0  ;;  %v758_v42 = vsel %vm3686_vm9, %v621_v31, 0.0  ;;  %2624 = vmatprep.subr.bf16.mxu1 %v3018_v28  ;;  %v3047_v29 = vld [vmem:[#allocation8 + $0x208] sm:$0xff]  }
 0x193   : > { %v3745_v44 = vpack.c.bf16 %v621_v31, %v620_v8  ;;  %v740_v45 = vsel %vm3702_vm12, %v619_v33, 0.0  ;;  %v792_v47 = vpack.c.bf16 %v742_v41, %v741_v24  ;;  %v852_v48 = vpack.c.bf16 %v758_v42, %v757_v30  ;;  %v3026_v31 = vld [vmem:[#allocation8 + $0x90] sm:$0xff]  }
 0x194   : > { %v756_v49 = vsel %vm3706_vm13, %v619_v33, 0.0  ;;  %v791_v43 = vpack.c.bf16 %v740_v45, %v739_v37  ;;  %v843_v51 = vpack.c.bf16 %v619_v33, %v618_v32  ;;  %v3758_v56 = vsel %vm1304_vm10, %v1309_v34, %v3732_v0  ;;  %v3028_v37 = vld [vmem:[#allocation8 + $0x20] sm:$0xff]  }
 0x195   : > { %848 = vst [vmem:[#allocation2 + $0x68] sm:$0xff] %v3745_v44  ;;  %v851_v53 = vpack.c.bf16 %v756_v49, %v755_v38  ;;  %v817_v57 = vshrl.u32 %v792_v47, 16  ;;  %v820_v58 = vshll.u32 %v792_v47, 16  ;;  %v878_v59 = vshll.u32 %v852_v48, 16  ;;  %2625 = vmatpush3.bf16.msra.mxu1 %v3019_v40  ;;  %v902_v30 = vld [vmem:[#allocation2 + $0x10] sm:$0xf0] }
 0x196   : > { %v882_v61 = vshrl.u32 %v852_v48, 16  ;;  %v809_v63 = vshrl.u32 %v791_v43, 16  ;;  %v812_v1 = vshll.u32 %v791_v43, 16  ;;  %2626 = vmatprep.subr.bf16.mxu1 %v3021_v46  ;;  %v3760_v8 = vrot.slane %v843_v51, 4  ;;  %v3030_v40 = vld [vmem:[#allocation8 + $0x68] sm:$0xff]   ;;  %v3029_v48 = vld [vmem:[#allocation8 + $0x98] sm:$0xff]  }
 0x197   : > { %v870_v2 = vshll.u32 %v851_v53, 16  ;;  %v874_v3 = vshrl.u32 %v851_v53, 16  ;;  %v819_v6 = vrot.slane %v817_v57, 7  ;;  %v880_v7 = vrot.slane %v878_v59, 1  ;;  %v901_v49 = vld [vmem:[#allocation2 + $0x8] sm:$0xf0] }
 0x198   : > { %v868_v9 = vor.u32 %v866_v35, %v3698_v15  ;;  %v811_v12 = vrot.slane %v809_v63, 7  ;;  %1200 = vmatmul.mubr.bf16.gmra.mrb[4].mxu1 %v807_v23  ;;  %v3773_v14 = vsel %vm1304_vm10, %v1306_v39, %v3752_v54  ;;  %v1312_v21 = vrot.slane %v3722_v36, 4  ;;  %v3034_v63 = vld [vmem:[#allocation8 + $0x30] sm:$0xff]  }
 0x199   : > { %v872_v13 = vrot.slane %v870_v2, 1  ;;  %v822_v16 = vor.u32 %v820_v58, %v819_v6  ;;  %v839_v15 = vsel %vm3565_vm2, %v819_v6, %v838_v50  ;;  %v884_v17 = vor.u32 %v882_v61, %v880_v7  ;;  %2627 = vmatpush3.bf16.msra.mxu1 %v3022_v62  ;;  %1207 = vmatprep.mubr.bf16.mxu1 %v843_v51  ;;  %v3031_v51 = vld [vmem:[#allocation8 + $0x28] sm:$0xff]   ;;  %v3033_v58 = vld [vmem:[#allocation8 + $0x70] sm:$0xff]   ;;  %v3032_v62 = vld [vmem:[#allocation8 + $0xa0] sm:$0xff]  }
 0x19a   : > { %840 = vst [vmem:[#allocation2 + $0x78] sm:$0x1] %v839_v15  ;;  %v814_v19 = vor.u32 %v812_v1, %v811_v12  ;;  %2628 = vmatprep.subr.bf16.mxu1 %v3024_v4  ;;  %v3789_v27 = vsel %vm1304_vm10, %v3732_v0, %v3760_v8  ;;  %v1714_v38 = vrot.slane %v3745_v44, 4  ;;  %v1308_v59 = vrot.slane %v901_v49, 4  ;;  %v3036_v1 = vld [vmem:[#allocation8 + $0x78] sm:$0xff]   ;;  %v3044_v15 = vld [vmem:[#allocation8 + $0x200] sm:$0xff]  }
 0x19b   : > { %v873_v20 = vsel %vm853_vm3, %v868_v9, %v872_v13  ;;  %v876_v60 = vor.u32 %v874_v3, %v872_v13  ;;  %v3781_v23 = vsel %vm3765_vm5, %v884_v17, %v897_v11  ;;  %v823_v25 = vsel %vm763_vm1, %v811_v12, %v822_v16  ;;  %v3035_v3 = vld [vmem:[#allocation8 + $0xa8] sm:$0xff]   ;;  %v900_v4 = vld [vmem:[#allocation2] sm:$0xf0]  ;;  %v3037_v6 = vld [vmem:[#allocation8 + $0x38] sm:$0xff]  }
 0x19c   : > { %2779 = vmatmul.mubr.bf16.vlgmr.msra.gmra.mrb[8].mxu0 %v873_v20  ;;  %v3784_v24 = vrot.slane %v873_v20, 4  ;;  %899 = vst [vmem:[#allocation2 + $0x70] sm:$0xff] %v3781_v23  ;;  %v815_v28 = vsel %vm763_vm1, %v3692_v5, %v814_v19  ;;  %837 = vst [vmem:[#allocation2 + $0x60] sm:$0xff] %v823_v25  ;;  %v1716_v5 = vrot.slane %v3781_v23, 4  ;;  %v1712_v45 = vrot.slane %v823_v25, 4  ;;  %v3040_v11 = vld [vmem:[#allocation8 + $0x180] sm:$0xff]  }
 0x19d   : > { %v881_v36 = vsel %vm853_vm3, %v876_v60, %v880_v7  ;;  %2787 = vmatpush3.bf16.msra.mxu0 %v3585_v52  ;;  %v3798_v33 = vrot.slane %v815_v28, 4  ;;  %2629 = vmatpush3.bf16.msra.mxu1 %v3025_v22  ;;  %v1311_v52 = vrot.slane %v902_v30, 4  ;;  %v3826_v47 = vsel %vm1304_vm10, %v3760_v8, %v1714_v38  ;;  %v3039_v7 = vld [vmem:[#allocation8 + $0x1c0] sm:$0xff]   ;;  %v3042_v12 = vld [vmem:[#allocation8 + $0x1c8] sm:$0xff]   ;;  %v3045_v16 = vld [vmem:[#allocation8 + $0x1d0] sm:$0xff]  }
 0x19e   : > { %2788 = vmatprep.subr.bf16.mxu0 %v3023_v18  ;;  %2782 = vmatprep.mubr.bf16.mxu0 %v881_v36  ;;  %v3796_v32 = vrot.slane %v881_v36, 4  ;;  %v3802_v35 = vsel %vm1304_vm10, %v1312_v21, %v3784_v24  ;;  %v1310_v2 = vsel %vm1304_vm10, %v1308_v59, %v1309_v34  ;;  %v1305_v9 = vrot.slane %v900_v4, 4  ;;  %v3041_v34 = vld [vmem:[#allocation8 + $0xb8] sm:$0xff]   ;;  %v3043_v13 = vld [vmem:[#allocation8 + $0x188] sm:$0xff]   ;;  %v3046_v17 = vld [vmem:[#allocation8 + $0x190] sm:$0xff]  }
 0x19f   : > { %2630 = vmatprep.subr.bf16.mxu1 %v3027_v26  ;;  %v3814_v42 = vsel %vm1304_vm10, %v3752_v54, %v3798_v33  ;;  %v3831_v43 = vsel %vm1304_vm10, %v3798_v33, %v1712_v45  ;;  %v1313_v57 = vsel %vm1304_vm10, %v1311_v52, %v1312_v21  ;;  %v3051_v20 = vld [vmem:[#allocation8 + $0x1e0] sm:$0xff]   ;;  %v1620_v60 = vld [vmem:[#allocation2 + $0x28] sm:$0xf0]  ;;  %v3050_v21 = vld [vmem:[#allocation8 + $0x210] sm:$0xff]  }
 0x1a0   : > { %v3809_v41 = vsel %vm1304_vm10, %v3784_v24, %v3796_v32  ;;  %1208 = vmatmul.mubr.bf16.gmra.mrb[8].mxu1 %v815_v28  ;;  %v3820_v46 = vsel %vm1304_vm10, %v3796_v32, %v1716_v5  ;;  %v1307_v55 = vsel %vm1304_vm10, %v1305_v9, %v1306_v39  ;;  %v3049_v39 = vld [vmem:[#allocation8 + $0x198] sm:$0xff]   ;;  %v1703_v26 = vrot.slane %v1620_v60, 4  ;;  %v3054_v28 = vld [vmem:[#allocation8 + $0x1e8] sm:$0xff]   ;;  %v1619_v52 = vld [vmem:[#allocation2 + $0x20] sm:$0xf0] }
 0x1a1   : > { %2789 = vmatpush3.bf16.msra.mxu0 %v3023_v18  ;;  %1215 = vmatprep.mubr.bf16.mxu1 %v3745_v44  ;;  %v1630_v50 = vld [vmem:[#allocation2 + $0x78] sm:$0xf]  ;;  %v3048_v18 = vld [vmem:[#allocation8 + $0x1d8] sm:$0xff]   ;;  %v1700_v49 = vrot.slane %v1619_v52, 4 }
 0x1a2   : > { %2790 = vmatprep.subr.bf16.mxu0 %v3026_v31  ;;  %2631 = vmatpush3.bf16.msra.mxu1 %v3028_v37  ;;  %v1718_v53 = vrot.slane %v1630_v50, 4  ;;  %v3053_v30 = vld [vmem:[#allocation8 + $0x218] sm:$0xff]   ;;  %v3055_v37 = vld [vmem:[#allocation8 + $0x1a8] sm:$0xff]   ;;  %v3058_v50 = vld [vmem:[#allocation8 + $0x1b0] sm:$0xff]  }
 0x1a3   : > { %2632 = vmatprep.subr.bf16.mxu1 %v3030_v40  ;;  %v914_v19 = vld [vmem:[#allocation2 + $0x70] sm:$0xf]  ;;  %v1705_v40 = vsel %vm1304_vm10, %v1703_v26, %v3784_v24  ;;  %v1702_v24 = vsel %vm1304_vm10, %v1700_v49, %v3732_v0  ;;  %v1631_v0 = vld [vmem:[#allocation2 + $0x80] sm:$0xf]  ;;  %v3067_v44 = vld [vmem:[#allocation9 + $0x18] sm:$0xff]  }
 0x1a4   : > { %2783 = vmatmul.mubr.bf16.gmra.mrb[12].mxu0 %v3781_v23  ;;  %v3836_v61 = vsel %vm1304_vm10, %v1712_v45, %v1718_v53  ;;  %v3057_v45 = vld [vmem:[#allocation8 + $0x1f0] sm:$0xff]   ;;  %v3059_v53 = vld [vmem:[#allocation8 + $0x228] sm:$0xff]  }
 0x1a5   : > { %2791 = vmatpush3.bf16.msra.mxu0 %v3026_v31  ;;  %2802 = vmatprep.mubr.bf16.mxu0 %v1313_v57  ;;  %v912_v31 = vld [vmem:[#allocation2 + $0x60] sm:$0xf]  ;;  %v1618_v57 = vld [vmem:[#allocation2 + $0x18] sm:$0xf0] }
 0x1a6   : > { %2792 = vmatprep.subr.bf16.mxu0 %v3029_v48  ;;  %2633 = vmatpush3.bf16.msra.mxu1 %v3031_v51  ;;  %v1697_v59 = vrot.slane %v1618_v57, 4  ;;  %v3069_v23 = vld [vmem:[#allocation9 + $0x28] sm:$0xff]  }
 0x1a7   : > { %2634 = vmatprep.subr.bf16.mxu1 %v3033_v58  ;;  %v3061_v58 = vld [vmem:[#allocation8 + $0x1b8] sm:$0xff]  }
 0x1a8   : > { %1216 = vmatmul.mubr.bf16.gmra.mrb[12].mxu1 %v823_v25  ;;  %v3052_v25 = vld [vmem:[#allocation8 + $0x1a0] sm:$0xff]  }
 0x1a9   : > { %2793 = vmatpush3.bf16.msra.mxu0 %v3029_v48  ;;  %1520 = vmatprep.mubr.bf16.mxu1 %v1310_v2  ;;  %v1326_v48 = vrot.slane %v912_v31, 4  ;;  %v1720_v2 = vrot.slane %v1631_v0, 4 }
 0x1aa   : > { %2794 = vmatprep.subr.bf16.mxu0 %v3032_v62  ;;  %2635 = vmatpush3.bf16.msra.mxu1 %v3034_v63  ;;  %v3063_v63 = vld [vmem:[#allocation8 + $0x238] sm:$0xff]  }
 0x1ab   : > { %2636 = vmatprep.subr.bf16.mxu1 %v3036_v1  ;;  %v1327_v51 = vsel %vm1304_vm10, %v3798_v33, %v1326_v48  ;;  %v1699_v33 = vsel %vm1304_vm10, %v1697_v59, %v3752_v54  ;;  %v1632_v1 = vld [vmem:[#allocation2 + $0x88] sm:$0xf] }
 0x1ac   : > { %v1722_v54 = vrot.slane %v1632_v1, 4 }
 0x1ad   : > { %2795 = vmatpush3.bf16.msra.mxu0 %v3032_v62  ;;  %v3062_v62 = vld [vmem:[#allocation8 + $0x230] sm:$0xff]  }
 0x1ae   : > { %2796 = vmatprep.subr.bf16.mxu0 %v3035_v3  ;;  %2637 = vmatpush3.bf16.msra.mxu1 %v3037_v6 }
 0x1af   : > { %2674 = vmatprep.subr.bf16.mxu1 %v3039_v7 }
 0x1b1   : > { %2797 = vmatpush3.bf16.msra.mxu0 %v3035_v3  ;;  %1521 = vmatmul.mubr.bf16.vlgmr.msra.gmra.mrb[16].mxu1 %v1307_v55 }
 0x1b2   : > { %2798 = vmatprep.subr.bf16.mxu0 %v3038_v10  ;;  %2675 = vmatpush3.bf16.msra.mxu1 %v3040_v11 }
 0x1b3   : > { %1528 = vmatprep.mubr.bf16.mxu1 %v3758_v56  ;;  %2676 = vmatprep.subr.bf16.mxu1 %v3042_v12  ;;  %v913_v56 = vld [vmem:[#allocation2 + $0x68] sm:$0xf] }
 0x1b4   : > { %v1328_v22 = vrot.slane %v913_v56, 4 }
 0x1b5   : > { %2799 = vmatpush3.bf16.msra.mxu0 %v3038_v10 }
 0x1b6   : > { %2800 = vmatprep.subr.bf16.mxu0 %v3041_v34  ;;  %2677 = vmatpush3.bf16.msra.mxu1 %v3043_v13  ;;  %v1329_v36 = vsel %vm1304_vm10, %v3760_v8, %v1328_v22  ;;  %v3056_v8 = vld [vmem:[#allocation8 + $0x220] sm:$0xff]  }
 0x1b7   : > { %2678 = vmatprep.subr.bf16.mxu1 %v3045_v16 }
 0x1b9   : > { %2801 = vmatpush3.bf16.msra.mxu0 %v3041_v34  ;;  %1529 = vmatmul.mubr.bf16.gmra.mrb[20].mxu1 %v3773_v14  ;;  %v1330_v14 = vrot.slane %v914_v19, 4 }
 0x1ba   : > { %2810 = vmatprep.subr.bf16.mxu0 %v3044_v15  ;;  %2679 = vmatpush3.bf16.msra.mxu1 %v3046_v17 }
 0x1bb   : > { %1536 = vmatprep.mubr.bf16.mxu1 %v3789_v27  ;;  %2680 = vmatprep.subr.bf16.mxu1 %v3048_v18 }
 0x1bc   : > { %2803 = vmatmul.mubr.bf16.vlgmr.msra.gmra.mrb[8].mxu0 %v3802_v35  ;;  %v1331_v35 = vsel %vm1304_vm10, %v3796_v32, %v1330_v14  ;;  %v3060_v32 = vld [vmem:[#allocation8 + $0x1f8] sm:$0xff]  }
 0x1bd   : > { %2806 = vmatprep.mubr.bf16.mxu0 %v3809_v41  ;;  %2811 = vmatpush3.bf16.msra.mxu0 %v3044_v15 }
 0x1be   : > { %2812 = vmatprep.subr.bf16.mxu0 %v3047_v29  ;;  %2681 = vmatpush3.bf16.msra.mxu1 %v3049_v39 }
 0x1bf   : > { %2682 = vmatprep.subr.bf16.mxu1 %v3051_v20 }
 0x1c1   : > { %2813 = vmatpush3.bf16.msra.mxu0 %v3047_v29  ;;  %1537 = vmatmul.mubr.bf16.gmra.mrb[24].mxu1 %v3814_v42 }
 0x1c2   : > { %2814 = vmatprep.subr.bf16.mxu0 %v3050_v21  ;;  %2683 = vmatpush3.bf16.msra.mxu1 %v3052_v25 }
 0x1c3   : > { %1544 = vmatprep.mubr.bf16.mxu1 %v1329_v36  ;;  %2684 = vmatprep.subr.bf16.mxu1 %v3054_v28 }
 0x1c4   : > { %2807 = vmatmul.mubr.bf16.gmra.mrb[12].mxu0 %v1331_v35 }
 0x1c5   : > { %2815 = vmatpush3.bf16.msra.mxu0 %v3050_v21  ;;  %2826 = vmatprep.mubr.bf16.mxu0 %v1705_v40 }
 0x1c6   : > { %2816 = vmatprep.subr.bf16.mxu0 %v3053_v30  ;;  %2685 = vmatpush3.bf16.msra.mxu1 %v3055_v37 }
 0x1c7   : > { %2686 = vmatprep.subr.bf16.mxu1 %v3057_v45 }
 0x1c9   : > { %2817 = vmatpush3.bf16.msra.mxu0 %v3053_v30  ;;  %1545 = vmatmul.mubr.bf16.gmra.mrb[28].mxu1 %v1327_v51 }
 0x1ca   : > { %2818 = vmatprep.subr.bf16.mxu0 %v3056_v8  ;;  %2687 = vmatpush3.bf16.msra.mxu1 %v3058_v50 }
 0x1cb   : > { %1912 = vmatprep.mubr.bf16.mxu1 %v1702_v24  ;;  %2688 = vmatprep.subr.bf16.mxu1 %v3060_v32 }
 0x1cd   : > { %2819 = vmatpush3.bf16.msra.mxu0 %v3056_v8 }
 0x1ce   : > { %2820 = vmatprep.subr.bf16.mxu0 %v3059_v53  ;;  %2689 = vmatpush3.bf16.msra.mxu1 %v3061_v58 }
 0x1d1   : > { %2821 = vmatpush3.bf16.msra.mxu0 %v3059_v53  ;;  %1913 = vmatmul.mubr.bf16.vlgmr.msra.gmra.mrb[32].mxu1 %v1699_v33 }
 0x1d2   : > { %2822 = vmatprep.subr.bf16.mxu0 %v3062_v62  ;;  %1920 = vmatprep.mubr.bf16.mxu1 %v3789_v27  ;;  %v1721_v27 = vsel %vm1304_vm10, %v1714_v38, %v1720_v2  ;;  %v3068_v38 = vld [vmem:[#allocation9 + $0x20] sm:$0xff]  }
 0x1d5   : > { %2823 = vmatpush3.bf16.msra.mxu0 %v3062_v62 }
 0x1d6   : > { %2824 = vmatprep.subr.bf16.mxu0 %v3063_v63 }
 0x1d9   : > { %2825 = vmatpush3.bf16.msra.mxu0 %v3063_v63  ;;  %1921 = vmatmul.mubr.bf16.gmra.mrb[36].mxu1 %v3814_v42  ;;  %v1723_v42 = vsel %vm1304_vm10, %v1716_v5, %v1722_v54  ;;  %v3070_v5 = vld [vmem:[#allocation9 + $0x30] sm:$0xff]  }
 0x1da   : > { %1928 = vmatprep.mubr.bf16.mxu1 %v3826_v47  ;;  %v3065_v47 = vld [vmem:[#allocation9 + $0x8] sm:$0xff]  }
 0x1dc   : > { %2827 = vmatmul.mubr.bf16.vlgmr.msra.gmra.mrb[8].mxu0 %v3809_v41  ;;  %v3064_v41 = vld [vmem:[#allocation9] sm:$0xff]  }
 0x1dd   : > { %2830 = vmatprep.mubr.bf16.mxu0 %v3820_v46  ;;  %2834 = vmatprep.subr.bf16.mxu1 %v3064_v41  ;;  %v3066_v46 = vld [vmem:[#allocation9 + $0x10] sm:$0xff]  }
 0x1de   : > { %2835 = vmatpush3.bf16.msra.mxu1 %v3064_v41 }
 0x1df   : > { %2836 = vmatprep.subr.bf16.mxu1 %v3065_v47 }
 0x1e1   : > { %1929 = vmatmul.mubr.bf16.gmra.mrb[40].mxu1 %v3831_v43  ;;  %v3071_v43 = vld [vmem:[#allocation9 + $0x38] sm:$0xff]  }
 0x1e2   : > { %1936 = vmatprep.mubr.bf16.mxu1 %v1721_v27  ;;  %2837 = vmatpush3.bf16.msra.mxu1 %v3065_v47 }
 0x1e3   : > { %2838 = vmatprep.subr.bf16.mxu1 %v3066_v46 }
 0x1e4   : > { %2831 = vmatmul.mubr.bf16.gmra.mrb[12].mxu0 %v1723_v42 }
 0x1e6   : > { %2839 = vmatpush3.bf16.msra.mxu1 %v3066_v46 }
 0x1e7   : > { %2840 = vmatprep.subr.bf16.mxu1 %v3067_v44 }
 0x1e9   : > { %1937 = vmatmul.mubr.bf16.gmra.mrb[44].mxu1 %v3836_v61 }
 0x1ea   : > { %2841 = vmatpush3.bf16.msra.mxu1 %v3067_v44 }
 0x1eb   : > { %2842 = vmatprep.subr.bf16.mxu1 %v3068_v38 }
 0x1ee   : > { %2843 = vmatpush3.bf16.msra.mxu1 %v3068_v38 }
 0x1ef   : > { %2844 = vmatprep.subr.bf16.mxu1 %v3069_v23 }
 0x1f2   : > { %2845 = vmatpush3.bf16.msra.mxu1 %v3069_v23 }
 0x1f3   : > { %2846 = vmatprep.subr.bf16.mxu1 %v3070_v5 }
 0x1f6   : > { %2847 = vmatpush3.bf16.msra.mxu1 %v3070_v5 }
 0x1f7   : > { %2848 = vmatprep.subr.bf16.mxu1 %v3071_v43 }
 0x1fa   : > { %2849 = vmatpush3.bf16.msra.mxu1 %v3071_v43 }
 0x263   : > { %v2586_v61 = vpop.f32.mrb[0].mxu1 }
 0x264   : > { %v2587_v3 = vpop.f32.mrb[1].mxu1 }
 0x265   : > { %v2588_v4 = vadd.f32 %v2587_v3, %v2586_v61  ;;  %v2589_v6 = vpop.f32.mrb[2].mxu1 }
 0x266   : > { %v2590_v7 = vpop.f32.mrb[3].mxu1 }
 0x267   : > { %v2591_v9 = vadd.f32 %v2590_v7, %v2589_v6 }
 0x26b   : > { %v2592_v10 = vpop.f32.mrb[4].mxu1 }
 0x26c   : > { %v2593_v11 = vpop.f32.mrb[5].mxu1 }
 0x26d   : > { %v2594_v12 = vadd.f32 %v2593_v11, %v2592_v10  ;;  %v2595_v55 = vpop.f32.mrb[6].mxu1  ;;  %v2500_v10 = vld [vmem:[%s3961_s5] ss:$0 sm:$0xff] }
 0x26e   : > { %v2596_v34 = vpop.f32.mrb[7].mxu1 }
 0x26f   : > { %v2597_v13 = vadd.f32 %v2596_v34, %v2595_v55 }
 0x273   : > { %v2598_v16 = vpop.f32.mrb[8].mxu1 }
 0x274   : > { %v2599_v15 = vpop.f32.mrb[9].mxu1 }
 0x275   : > { %v2600_v17 = vadd.f32 %v2599_v15, %v2598_v16  ;;  %v2601_v18 = vpop.f32.mrb[10].mxu1  ;;  %v2501_v16 = vld [vmem:[%s3962_s6] ss:$0 sm:$0xff] }
 0x276   : > { %v2602_v29 = vpop.f32.mrb[11].mxu1 }
 0x277   : > { %v2603_v39 = vadd.f32 %v2602_v29, %v2601_v18 }
 0x27b   : > { %v2604_v56 = vpop.f32.mrb[12].mxu1 }
 0x27c   : > { %v2605_v19 = vpop.f32.mrb[13].mxu1 }
 0x27d   : > { %v2606_v20 = vadd.f32 %v2605_v19, %v2604_v56  ;;  %v2607_v60 = vpop.f32.mrb[14].mxu1 }
 0x27e   : > { %v2608_v21 = vpop.f32.mrb[15].mxu1 }
 0x27f   : > { %v2609_v22 = vadd.f32 %v2608_v21, %v2607_v60 }
 0x284   : > { %v2638_v14 = vpop.f32.mrb[16].mxu1 }
 0x285   : > { %v2639_v25 = vpop.f32.mrb[17].mxu1 }
 0x286   : > { %v2640_v26 = vadd.f32 %v2639_v25, %v2638_v14  ;;  %v2641_v28 = vpop.f32.mrb[18].mxu1 }
 0x287   : > { %v2642_v36 = vpop.f32.mrb[19].mxu1 }
 0x288   : > { %v2861_v30 = vadd.f32 %v2640_v26, %v2588_v4  ;;  %v2643_v31 = vadd.f32 %v2642_v36, %v2641_v28 }
 0x28a   : > { %v2867_v35 = vadd.f32 %v2643_v31, %v2591_v9 }
 0x28c   : > { %v2644_v37 = vpop.f32.mrb[20].mxu1 }
 0x28d   : > { %v2645_v52 = vpop.f32.mrb[21].mxu1 }
 0x28e   : > { %v2646_v40 = vadd.f32 %v2645_v52, %v2644_v37  ;;  %v2647_v45 = vpop.f32.mrb[22].mxu1 }
 0x28f   : > { %v2648_v48 = vpop.f32.mrb[23].mxu1 }
 0x290   : > { %v2858_v8 = vadd.f32 %v2646_v40, %v2594_v12  ;;  %v2649_v49 = vadd.f32 %v2648_v48, %v2647_v45 }
 0x292   : > { %v2864_v50 = vadd.f32 %v2649_v49, %v2597_v13 }
 0x294   : > { %v2650_v32 = vpop.f32.mrb[24].mxu1 }
 0x295   : > { %v2651_v51 = vpop.f32.mrb[25].mxu1 }
 0x296   : > { %v2652_v24 = vadd.f32 %v2651_v51, %v2650_v32  ;;  %v2653_v53 = vpop.f32.mrb[26].mxu1 }
 0x297   : > { %v2654_v57 = vpop.f32.mrb[27].mxu1 }
 0x298   : > { %v2873_v58 = vadd.f32 %v2652_v24, %v2600_v17  ;;  %v2655_v59 = vadd.f32 %v2654_v57, %v2653_v53 }
 0x29a   : > { %v2879_v62 = vadd.f32 %v2655_v59, %v2603_v39 }
 0x29c   : > { %v2656_v33 = vpop.f32.mrb[28].mxu1 }
 0x29d   : > { %v2657_v63 = vpop.f32.mrb[29].mxu1 }
 0x29e   : > { %v2658_v0 = vadd.f32 %v2657_v63, %v2656_v33  ;;  %v2659_v1 = vpop.f32.mrb[30].mxu1 }
 0x29f   : > { %v2660_v2 = vpop.f32.mrb[31].mxu1 }
 0x2a0   : > { %v3875_v54 = vadd.f32 %v2658_v0, %v2606_v20  ;;  %v2661_v27 = vadd.f32 %v2660_v2, %v2659_v1 }
 0x2a2   : > { %v3877_v42 = vadd.f32 %v2661_v27, %v2609_v22 }
 0x2a4   : > { %v2690_v41 = vpop.f32.mrb[32].mxu1 }
 0x2a5   : > { %v2691_v47 = vpop.f32.mrb[33].mxu1 }
 0x2a6   : > { %v2692_v46 = vadd.f32 %v2691_v47, %v2690_v41  ;;  %v2693_v44 = vpop.f32.mrb[34].mxu1 }
 0x2a7   : > { %v2694_v38 = vpop.f32.mrb[35].mxu1 }
 0x2a8   : > { %v2695_v23 = vadd.f32 %v2694_v38, %v2693_v44  ;;  %v2862_v5 = vadd.f32 %v2861_v30, %v2692_v46 }
 0x2aa   : > { %v2868_v43 = vadd.f32 %v2867_v35, %v2695_v23 }
 0x2ac   : > { %v2696_v61 = vpop.f32.mrb[36].mxu1 }
 0x2ad   : > { %v2697_v3 = vpop.f32.mrb[37].mxu1 }
 0x2ae   : > { %v2698_v6 = vadd.f32 %v2697_v3, %v2696_v61  ;;  %v2699_v7 = vpop.f32.mrb[38].mxu1 }
 0x2af   : > { %v2828_v4 = vpop.f32.mrb[8].mxu0  ;;  %v2700_v11 = vpop.f32.mrb[39].mxu1 }
 0x2b0   : > { %v1979_v9 = vpop.f32.mrb[9].mxu0  ;;  %v2859_v34 = vadd.f32 %v2858_v8, %v2698_v6  ;;  %v2701_v13 = vadd.f32 %v2700_v11, %v2699_v7 }
 0x2b1   : > { %v2863_v12 = vadd.f32 %v2862_v5, %v1979_v9  ;;  %v2829_v55 = vpop.f32.mrb[10].mxu0 }
 0x2b2   : > { %v1982_v15 = vpop.f32.mrb[11].mxu0  ;;  %v2860_v29 = vadd.f32 %v2859_v34, %v2828_v4  ;;  %v2865_v39 = vadd.f32 %v2864_v50, %v2701_v13  ;;  %v3076_v34 = vld [vmem:[%s3546_s9 + $0x8] sm:$0xff]  }
 0x2b3   : > { %v2025_v17 = vmul.f32 %v2863_v12, %v2500_v10  ;;  %v2869_v18 = vadd.f32 %v2868_v43, %v1982_v15  ;;  %v2221_v13 = vunpack.c.l.bf16 %v3076_v34 }
 0x2b4   : > { %v2027_v20 = vmul.f32 %v2860_v29, %v2500_v10  ;;  %v2866_v60 = vadd.f32 %v2865_v39, %v2829_v55  ;;  %v2702_v21 = vpop.f32.mrb[40].mxu1  ;;  %v2511_v55 = vld [vmem:[%s4029_s19] ss:$0 sm:$0xff]  ;;  %v2222_v39 = vunpack.c.h.bf16 %v3076_v34 }
 0x2b5   : > { %v2040_v56 = vadd.f32 %v2501_v16, %v2025_v17  ;;  %v2026_v19 = vmul.f32 %v2869_v18, %v2500_v10  ;;  %v2703_v22 = vpop.f32.mrb[41].mxu1  ;;  %v3077_v17 = vld [vmem:[%s3546_s9] sm:$0xff]  }
 0x2b6   : > { %v2042_v25 = vadd.f32 %v2501_v16, %v2027_v20  ;;  %v2028_v26 = vmul.f32 %v2866_v60, %v2500_v10  ;;  %v2705_v36 = vpop.f32.mrb[42].mxu1  ;;  %v2704_v31 = vadd.f32 %v2703_v22, %v2702_v21  ;;  %v2219_v18 = vunpack.c.l.bf16 %v3077_v17 }
 0x2b7   : > { %v2041_v14 = vadd.f32 %v2501_v16, %v2026_v19  ;;  %v2832_v28 = vpop.f32.mrb[12].mxu0  ;;  %v2706_v35 = vpop.f32.mrb[43].mxu1  ;;  %v2048_v37 = vmax.f32 %v2040_v56, 0.0  ;;  %v2220_v60 = vunpack.c.h.bf16 %v3077_v17 }
 0x2b8   : > { %v1995_v30 = vpop.f32.mrb[13].mxu0  ;;  %v2043_v40 = vadd.f32 %v2501_v16, %v2028_v26  ;;  %v2707_v48 = vadd.f32 %v2706_v35, %v2705_v36  ;;  %v2874_v49 = vadd.f32 %v2873_v58, %v2704_v31  ;;  %v2050_v50 = vmax.f32 %v2042_v25, 0.0 }
 0x2b9   : > { %v2049_v52 = vmax.f32 %v2041_v14, 0.0  ;;  %v2833_v45 = vpop.f32.mrb[14].mxu0 }
 0x2ba   : > { %v1998_v8 = vpop.f32.mrb[15].mxu0  ;;  %v2051_v32 = vmax.f32 %v2043_v40, 0.0  ;;  %v2880_v51 = vadd.f32 %v2879_v62, %v2707_v48  ;;  %v2875_v53 = vadd.f32 %v2874_v49, %v1995_v30 }
 0x2bb   : > { %v2056_v24 = vpack.c.bf16 %v2049_v52, %v2048_v37 }
 0x2bc   : > { %v2057_v57 = vpack.c.bf16 %v2051_v32, %v2050_v50  ;;  %v2881_v59 = vadd.f32 %v2880_v51, %v1998_v8  ;;  %v2708_v33 = vpop.f32.mrb[44].mxu1  ;;  %v2029_v63 = vmul.f32 %v2875_v53, %v2500_v10  ;;  %v3078_v8 = vld [vmem:[%s3546_s9 + $0x18] sm:$0xff]   ;;  %v3079_v51 = vld [vmem:[%s3546_s9 + $0x10] sm:$0xff]   ;;  %s2534_s9 = sshll.u32 %s3356_s17, 9  ;;  %s3194_s17 = scalar_lea.vmem %s3905_s25, 512 }
 0x2bd   : > { %2850 = vmatprep.mubr.bf16.mxu1 %v2056_v24  ;;  %v2709_v0 = vpop.f32.mrb[45].mxu1  ;;  %v2225_v49 = vunpack.c.l.bf16 %v3078_v8  ;;  %v2223_v24 = vunpack.c.l.bf16 %v3079_v51  ;;  %s3910_s26 = scalar_lea.hbm %s4030_s29, %s2534_s9  ;;  %p3195_p10 = scmp.ne.s32.totalorder %s3905_s25, %s3194_s17 }
 0x2be   : > { %v2030_v1 = vmul.f32 %v2881_v59, %v2500_v10  ;;  %v2710_v2 = vadd.f32 %v2709_v0, %v2708_v33  ;;  %v2711_v27 = vpop.f32.mrb[46].mxu1  ;;  %2851 = vmatmul.mubr.bf16.vlgmr.msra.gmra.mrb[48].mxu1 %v2057_v57  ;;  %v2044_v47 = vadd.f32 %v2501_v16, %v2029_v63  ;;  %v2226_v59 = vunpack.c.h.bf16 %v3078_v8  ;;  %p3202_p1 = scmp.lt.s32.totalorder %s3200_s28, %s3194_s17 }
 0x2bf   : > { %v2712_v41 = vpop.f32.mrb[47].mxu1  ;;  %p3196_p3 = pnand %p3195_p10, %p3489_p5 }
 0x2c0   : > { %v2871_v46 = vadd.f32 %v3875_v54, %v2710_v2  ;;  %v2713_v58 = vadd.f32 %v2712_v41, %v2711_v27  ;;  %v2045_v44 = vadd.f32 %v2501_v16, %v2030_v1  ;;  %v2052_v23 = vmax.f32 %v2044_v47, 0.0  ;;  %v2510_v54 = vld [vmem:[%s3964_s8] ss:$0 sm:$0xff]  ;;  %p3203_p2 = por %p3202_p1, %p3201_p12 }
 0x2c1   : > { %v2224_v1 = vunpack.c.h.bf16 %v3079_v51  ;;  %p3197_p7 = pneg %p3196_p3 }
 0x2c2   : > { %v2872_v38 = vadd.f32 %v2871_v46, %v2832_v28  ;;  %v2877_v62 = vadd.f32 %v3877_v42, %v2713_v58  ;;  %v2053_v5 = vmax.f32 %v2045_v44, 0.0 }
 0x2c3   : > { %p3204_p4 = pnand %p3203_p2, %p3197_p7 }
 0x2c4   : > { %v2031_v43 = vmul.f32 %v2872_v38, %v2500_v10  ;;  %v2878_v61 = vadd.f32 %v2877_v62, %v2833_v45  ;;  %v2058_v3 = vpack.c.bf16 %v2053_v5, %v2052_v23 }
 0x2c6   : > { %v2032_v4 = vmul.f32 %v2878_v61, %v2500_v10  ;;  %2854 = vmatprep.mubr.bf16.mxu1 %v2058_v3  ;;  %v2046_v6 = vadd.f32 %v2501_v16, %v2031_v43 }
 0x2c8   : > { %v2047_v7 = vadd.f32 %v2501_v16, %v2032_v4  ;;  %v2054_v9 = vmax.f32 %v2046_v6, 0.0 }
 0x2ca   : > { %v2055_v11 = vmax.f32 %v2047_v7, 0.0 }
 0x2cc   : > { %v2059_v12 = vpack.c.bf16 %v2055_v11, %v2054_v9 }
 0x2ce   : > { %2855 = vmatmul.mubr.bf16.gmra.mrb[52].mxu1 %v2059_v12 }
 0x391   : > { %v2852_v42 = vpop.f32.mrb[48].mxu1 }
 0x392   : > { %v2198_v15 = vmul.f32 %v2852_v42, %v2510_v54  ;;  %v2158_v10 = vpop.f32.mrb[49].mxu1 }
 0x393   : > { %v2196_v16 = vmul.f32 %v2510_v54, %v2158_v10  ;;  %v2853_v29 = vpop.f32.mrb[50].mxu1 }
 0x394   : > { %v2213_v56 = vadd.f32 %v2511_v55, %v2198_v15  ;;  %v2199_v19 = vmul.f32 %v2853_v29, %v2510_v54  ;;  %v2161_v20 = vpop.f32.mrb[51].mxu1 }
 0x395   : > { %v2211_v21 = vadd.f32 %v2511_v55, %v2196_v16  ;;  %v2197_v22 = vmul.f32 %v2510_v54, %v2161_v20 }
 0x396   : > { %v2229_v14 = vadd.f32 %v2221_v13, %v2213_v56  ;;  %v2214_v25 = vadd.f32 %v2511_v55, %v2199_v19 }
 0x397   : > { %v2227_v26 = vadd.f32 %v2219_v18, %v2211_v21  ;;  %v2212_v28 = vadd.f32 %v2511_v55, %v2197_v22 }
 0x398   : > { %v2230_v36 = vadd.f32 %v2222_v39, %v2214_v25  ;;  %v2237_v31 = vmax.f32 %v2229_v14, 0.0 }
 0x399   : > { %v2228_v30 = vadd.f32 %v2220_v60, %v2212_v28  ;;  %v2235_v37 = vmax.f32 %v2227_v26, 0.0 }
 0x39a   : > { %v2238_v35 = vmax.f32 %v2230_v36, 0.0 }
 0x39b   : > { %v2236_v52 = vmax.f32 %v2228_v30, 0.0 }
 0x39c   : > { %v2543_v40 = vpack.c.bf16 %v2238_v35, %v2237_v31 }
 0x39d   : > { %v2538_v45 = vpack.c.bf16 %v2236_v52, %v2235_v37 }
 0x39e   : > { %2555 = vst [vmem:[%s3897_s21 + $0x8] sm:$0xff] %v2543_v40  }
 0x39f   : > { %2539 = vst [vmem:[%s3897_s21] sm:$0xff] %v2538_v45  }
 0x3a1   : > { %v2856_v48 = vpop.f32.mrb[52].mxu1 }
 0x3a2   : > { %v2202_v50 = vmul.f32 %v2856_v48, %v2510_v54  ;;  %v2174_v32 = vpop.f32.mrb[53].mxu1 }
 0x3a3   : > { %v2200_v53 = vmul.f32 %v2510_v54, %v2174_v32  ;;  %v2857_v57 = vpop.f32.mrb[54].mxu1 }
 0x3a4   : > { %v2217_v33 = vadd.f32 %v2511_v55, %v2202_v50  ;;  %v2203_v63 = vmul.f32 %v2857_v57, %v2510_v54  ;;  %v2177_v0 = vpop.f32.mrb[55].mxu1 }
 0x3a5   : > { %v2215_v2 = vadd.f32 %v2511_v55, %v2200_v53  ;;  %v2201_v27 = vmul.f32 %v2510_v54, %v2177_v0 }
 0x3a6   : > { %v2233_v41 = vadd.f32 %v2225_v49, %v2217_v33  ;;  %v2218_v47 = vadd.f32 %v2511_v55, %v2203_v63 }
 0x3a7   : > { %v2231_v46 = vadd.f32 %v2223_v24, %v2215_v2  ;;  %v2216_v58 = vadd.f32 %v2511_v55, %v2201_v27 }
 0x3a8   : > { %v2234_v44 = vadd.f32 %v2226_v59, %v2218_v47  ;;  %v2241_v62 = vmax.f32 %v2233_v41, 0.0 }
 0x3a9   : > { %v2232_v38 = vadd.f32 %v2224_v1, %v2216_v58  ;;  %v2239_v5 = vmax.f32 %v2231_v46, 0.0 }
 0x3aa   : > { %v2242_v23 = vmax.f32 %v2234_v44, 0.0 }
 0x3ab   : > { %v2240_v43 = vmax.f32 %v2232_v38, 0.0 }
 0x3ac   : > { %v2553_v61 = vpack.c.bf16 %v2242_v23, %v2241_v62 }
 0x3ad   : > { %v2548_v3 = vpack.c.bf16 %v2240_v43, %v2239_v5 }
 0x3ae   : > { %2557 = vst [vmem:[%s3897_s21 + $0x18] sm:$0xff] %v2553_v61  }
 0x3af   : > { %2556 = vst [vmem:[%s3897_s21 + $0x10] sm:$0xff] %v2548_v3  }
 0x3b0   : > { %3207 = shalt.err (!%p3204_p4)
}
 0x3b1   : > { %s3208_s27 = scalar_lea.hbm %s3910_s26, 512  ;;  %s3212_s21 = scalar_lea.hbm %s4030_s29, 1024 }
 0x3b2   : > { %p3209_p9 = scmp.ne.s32.totalorder %s3910_s26, %s3208_s27  ;;  %p3213_p8 = scmp.lt.u32.totalorder %s3910_s26, %s4030_s29 }
 0x3b3   : > { %p3214_p13 = scmp.lt.u32.totalorder %s3212_s21, %s3208_s27  ;;  %p3216_p10 = scmp.lt.u32.totalorder %s3208_s27, %s3910_s26 }
 0x3b4   : > { %p3210_p0 = pnand %p3209_p9, %p3489_p5 }
 0x3b5   : > { %p3215_p6 = por %p3214_p13, %p3213_p8 }
 0x3b6   : > { %p3211_p11 = pneg %p3210_p0 }
 0x3b7   : > { %p3217_p3 = por %p3216_p10, %p3215_p6 }
 0x3b9   : > { %p3218_p7 = pnand %p3217_p3, %p3211_p11 }
 0x3bb   : > { %3221 = shalt.err (!%p3218_p7)
}
 0x3bc   : > { %s3278_s11 = smov 64   ;;  %s3279_s17 = smov 4  }
 0x3bd   : > { %2912 = dma.vmem_to_hbm [thread:$0]  (%p3489_p5), %s3905_s25, 512, %s3910_s26, %s2284_s24, %s3278_s11, %s3278_s11, %s3279_s17  }
 0x3be PF: > { %s4031_s12 = sld [smem:[#allocation16_spill]]  ;;  %s4032_s18 = sld [smem:[#allocation17_spill]] }
 0x3bf   : > { %p4034_p1 = scmp.ge.s32.totalorder %s3268_s16, 2 }
 0x3c4   : > { %s2312_s28 = sand.u32 1, %s4031_s12   ;;  %p4033_p12 = scmp.ne.s32.totalorder %s4032_s18, 0 }
 0x3c5   : > { %s2313_s27 = scalar_lea.sflag [#allocation5], %s2312_s28 }
 0x3c6   : > { %p2929_p2 = pnand %p4034_p1, %p4033_p12 }
 0x3c8   : > { %3251 = dma.done.wait (!%p2929_p2), %s2313_s27, 512  }
 0x3c9   : > { %3253 = vsyncadd (!%p2929_p2), %s2313_s27, 4294966784  ;;  %s4035_s23 = smov %s3485_s13  ;;  %p25_p4 = scmp.ge.s32.totalorder %s3475_s22, 4  }
 0x3ca   : > { %s4036_s13 = smov %s3260_s14  ;;  %s4037_s14 = smov %s3264_s15 }
 0x3cb   : > { %s4038_s15 = smov %s4035_s23  ;;  %s4039_s16 = smov %s3475_s22 }
 0x3cc   :  { %27 = sbr.rel (!%p25_p4) target bundleno = 10 (0xa), region = 119 }
 0x3d3   :  { %2318 = vsyncpa [#allocation4], 1 }
 0x3d4   :  { %2320 = vsyncpa [#allocation4 + $0x1], 1 }
 0x3d5   :  { %2321 = vsyncpa [#allocation7], 1 }
 0x3d6   :  { %2322 = vsyncpa [#allocation10], 1 }
 0x3d7   :  { %2323 = vsyncpa [#allocation5], 1 }
 0x3d8   :  { %2325 = vsyncpa [#allocation5 + $0x1], 1 }

</bundles_post_ra>
